<compile_context>
chip_gen: v7x
topology: tpu7x:2x2x1
jax: 0.10.0
libtpu: 0.0.40
codegen_flags: <defaults>
</compile_context>

<pallas_src>
import jax
import jax.numpy as jnp
from jax.experimental import pallas as pl
from jax.experimental.pallas import tpu as pltpu


def _pad8(n: int) -> int:
    return (n + 7) // 8 * 8


# ---------------------------------------------------------------------------
# Static layer layout inside the packed weight blobs.
# Each entry: (blob, row_offset, k, n, bias_row) for  y = relu(x @ W + b).
# Blobs are grouped by output lane width so no lane slicing is ever needed:
#   w512: [fw3 (256,512); hw1_folded (128,512)]
#   w256: [fw2 (128,256); fw4 (512,256)]
#   w128: [fw1 (pad8(in),128); fw5_pad (256,128); hw3 (512,128);
#          hw4_pad (128,128); hw5_pad (128,128)]
# Bias blob: [9, 512] f32, one row per layer, lane-padded with zeros.
# ---------------------------------------------------------------------------
def _layer_layout(input_size: int):
    k1 = _pad8(input_size)
    fighter = (
        ("w128", 0,          input_size, 128, 0),   # fighter fc1
        ("w256", 0,          128,        256, 1),   # fighter fc2
        ("w512", 0,          256,        512, 2),   # fighter fc3
        ("w256", 128,        512,        256, 3),   # fighter fc4
        ("w128", k1,         256,        128, 4),   # fighter fc5 (127 -> 128 pad)
    )
    head = (
        ("w512", 256,        128,        512, 5),   # head fc1 (antisym fold, K 256->128)
        ("w128", k1 + 256,   512,        128, 6),   # head fc3
        ("w128", k1 + 768,   128,        128, 7),   # head fc4 (64 -> 128 lane pad)
        ("w128", k1 + 896,   128,        128, 8),   # head fc5 (padded to [128, 128])
    )
    return fighter, head


# ---------------------------------------------------------------------------
# One-time (model-load) parameter packing: pad / fold / cast -> 4 buffers.
# ---------------------------------------------------------------------------
def pack_params(params, input_size):
    assert len(params) == 9
    (fw1, fb1), (fw2, fb2), (fw3, fb3), (fw4, fb4), (fw5, fb5) = params[:5]
    (hw1, hb1), (hw3, hb3), (hw4, hb4), (hw5, hb5) = params[5:]

    # The folding / padding tricks below rely on exactly these shapes and on
    # dropout being the identity (p == 0.0 module default / inference mode).
    assert fw1.shape == (input_size, 128) and fw5.shape == (256, 127)
    assert hw1.shape == (256, 512) and hw4.shape == (128, 64) and hw5.shape == (64, 1)

    f32 = lambda a: a.astype(jnp.float32)
    row = lambda b: f32(b).reshape(1, -1)

    # Fighter fc5: pad 127 -> 128 output lanes.  Lane 127 has a zero weight column
    # and zero bias, so it is exactly 0 after ReLU (odds get injected there later).
    fw5p = jnp.pad(f32(fw5), ((0, 0), (0, 1)))
    fb5p = jnp.pad(row(fb5), ((0, 0), (0, 1)))

    # Head fc1: fold  concat([d, -d]) @ W  ==  d @ (W[:128] - W[128:])  (in f32, cast once).
    hw1e = f32(hw1)[:128, :] - f32(hw1)[128:, :]

    # Head fc4/fc5: pad to 128 lanes so the last matmul + output store are lane-dense.
    hw4p = jnp.pad(f32(hw4), ((0, 0), (0, 64)))
    hb4p = jnp.pad(row(hb4), ((0, 0), (0, 64)))
    hw5p = jnp.pad(f32(hw5), ((0, 64), (0, 127)))   # [128, 128], logits in lane 0
    hb5p = jnp.pad(row(hb5), ((0, 0), (0, 127)))

    k1 = _pad8(input_size)
    fw1p = jnp.pad(f32(fw1), ((0, k1 - input_size), (0, 0)))   # zero rows, never dotted

    w512 = jnp.concatenate([f32(fw3), hw1e], axis=0).astype(jnp.bfloat16)          # [384, 512]
    w256 = jnp.concatenate([f32(fw2), f32(fw4)], axis=0).astype(jnp.bfloat16)      # [640, 256]
    w128 = jnp.concatenate([fw1p, fw5p, f32(hw3), hw4p, hw5p],
                           axis=0).astype(jnp.bfloat16)                            # [k1+1024, 128]

    def pad_bias(b):
        b = b.reshape(1, -1).astype(jnp.float32)
        return jnp.pad(b, ((0, 0), (0, 512 - b.shape[1])))

    biases = jnp.concatenate(
        [pad_bias(b) for b in (fb1, fb2, fb3, fb4, fb5p, hb1, hb3, hb4p, hb5p)],
        axis=0)                                                                    # [9, 512] f32

    return (w512, w256, w128, biases)


# ---------------------------------------------------------------------------
# Pallas kernel (built per static (input_size, tile_b) configuration).
# ---------------------------------------------------------------------------
def _make_kernel(input_size: int, tile_b: int):
    fighter_layers, head_layers = _layer_layout(input_size)

    def kernel(x1_ref, x2_ref, odds_ref, w512_ref, w256_ref, w128_ref, b_ref, out_ref):
        blobs = {"w512": w512_ref, "w256": w256_ref, "w128": w128_ref}

        def layer(x, spec, relu=True):
            blob, r0, k, n, brow = spec
            w = blobs[blob][r0:r0 + k, :]              # [k, n] bf16 (static slice)
            b = b_ref[brow:brow + 1, 0:n]              # [1, n] f32
            y = jnp.dot(x.astype(jnp.bfloat16), w,
                        preferred_element_type=jnp.float32) + b
            return jnp.maximum(y, 0.0) if relu else y

        # Shared FighterNet tower, both fighters batched along the sublane axis.
        f = jnp.concatenate([x1_ref[...], x2_ref[...]], axis=0)   # [2*TB, input_size]
        for spec in fighter_layers:
            f = layer(f, spec)                                     # -> [2*TB, 128]

        # Antisymmetric difference; lane 127 is exactly 0 (fc5 zero pad), so inject
        # odds1 - odds2 there with a cheap VPU select (no lane-axis concatenate).
        d = f[:tile_b, :] - f[tile_b:, :]                          # [TB, 128]
        lane = jax.lax.broadcasted_iota(jnp.int32, d.shape, 1)
        d = jnp.where(lane == d.shape[1] - 1, odds_ref[...], d)

        # Head (the concat([d, -d]) of the original module is folded into hw1e).
        h = d
        for spec in head_layers[:-1]:
            h = layer(h, spec)
        logits = layer(h, head_layers[-1], relu=False)             # [TB, 128], lane 0 real
        out_ref[...] = jax.nn.sigmoid(logits)

    return kernel


# ---------------------------------------------------------------------------
# Forward wrapper (jit this; `packed` comes from pack_params at model load).
# ---------------------------------------------------------------------------
def symmetric_fight_forward(X1, X2, odds1, odds2, packed):
    w512, w256, w128, biases = packed
    B, input_size = X1.shape

    # Batch tile: multiple of 8 (sublane boundary for the tower split), capped at
    # 256 rows (=> 512 stacked rows per grid step through the fighter tower).
    bp = _pad8(max(B, 8))
    tile_b = min(256, bp)
    bp = ((bp + tile_b - 1) // tile_b) * tile_b
    pad = bp - B

    x1 = jnp.pad(X1.astype(jnp.float32), ((0, pad), (0, 0)))
    x2 = jnp.pad(X2.astype(jnp.float32), ((0, pad), (0, 0)))
    odds_diff = jnp.pad((odds1 - odds2).astype(jnp.float32), ((0, pad), (0, 0)))

    const = lambda i: (0, 0)
    out = pl.pallas_call(
        _make_kernel(input_size, tile_b),
        out_shape=jax.ShapeDtypeStruct((bp, 128), jnp.float32),
        grid_spec=pltpu.PrefetchScalarGridSpec(
            num_scalar_prefetch=0,
            grid=(bp // tile_b,),
            in_specs=[
                pl.BlockSpec((tile_b, input_size), lambda i: (i, 0)),   # X1 tile
                pl.BlockSpec((tile_b, input_size), lambda i: (i, 0)),   # X2 tile
                pl.BlockSpec((tile_b, 1), lambda i: (i, 0)),            # odds diff tile
                pl.BlockSpec(w512.shape, const),    # weights: constant index map ->
                pl.BlockSpec(w256.shape, const),    # VMEM-resident across the grid
                pl.BlockSpec(w128.shape, const),
                pl.BlockSpec(biases.shape, const),
            ],
            out_specs=pl.BlockSpec((tile_b, 128), lambda i: (i, 0)),
        ),
        compiler_params=pltpu.CompilerParams(
            dimension_semantics=("parallel",)),      # shards batch across v7x's 2 TCs
    )(x1, x2, odds_diff, w512, w256, w128, biases)

    return out[:B, 0:1]


# ---------------------------------------------------------------------------
# Deterministic synthetic parameters (mirrors the module's layer shapes).
# ---------------------------------------------------------------------------
def make_params(key, input_size):
    layer_dims = [
        # FighterNet
        (input_size, 128), (128, 256), (256, 512), (512, 256), (256, 127),
        # SymmetricFightNet head: fc1, fc3, fc4, fc5
        (256, 512), (512, 128), (128, 64), (64, 1),
    ]
    params = []
    for (din, dout) in layer_dims:
        key, kw, kb = jax.random.split(key, 3)
        scale = 1.0 / jnp.sqrt(jnp.float32(din))
        w = jax.random.uniform(kw, (din, dout), jnp.float32, -scale, scale)
        b = jax.random.uniform(kb, (1, dout), jnp.float32, -scale, scale)
        params.append((w, b))
    return params


# ---------------------------------------------------------------------------
# Pure-JAX references.
# ---------------------------------------------------------------------------
def reference_forward(X1, X2, odds1, odds2, params, weight_dtype=jnp.float32):
    """Original (unfolded, two-tower) structure; exact module math at f32."""
    fighter_p, head_p = params[:5], params[5:]

    def lin(x, w, b, relu=True):
        y = jnp.dot(x.astype(weight_dtype), w.astype(weight_dtype),
                    preferred_element_type=jnp.float32) + b.astype(jnp.float32)
        return jnp.maximum(y, 0.0) if relu else y

    def fighter(x):
        for (w, b) in fighter_p:
            x = lin(x, w, b)
        return x

    o1 = jnp.concatenate([fighter(X1), odds1], axis=1)
    o2 = jnp.concatenate([fighter(X2), odds2], axis=1)
    x = jnp.concatenate([o1 - o2, o2 - o1], axis=1)
    for (w, b) in head_p[:-1]:
        x = lin(x, w, b)
    w, b = head_p[-1]
    return jax.nn.sigmoid(lin(x, w, b, relu=False))


def packed_reference(X1, X2, odds1, odds2, packed, input_size):
    """Pure-JAX emulation of the exact kernel math (packed bf16 weights, folded head)."""
    w512, w256, w128, biases = packed
    blobs = {"w512": w512, "w256": w256, "w128": w128}
    fighter_layers, head_layers = _layer_layout(input_size)

    def layer(x, spec, relu=True):
        blob, r0, k, n, brow = spec
        w = blobs[blob][r0:r0 + k, :]
        b = biases[brow:brow + 1, 0:n]
        y = jnp.dot(x.astype(jnp.bfloat16), w, preferred_element_type=jnp.float32) + b
        return jnp.maximum(y, 0.0) if relu else y

    f = jnp.concatenate([X1, X2], axis=0).astype(jnp.float32)
    for spec in fighter_layers:
        f = layer(f, spec)
    B = X1.shape[0]
    d = f[:B] - f[B:]
    d = d.at[:, -1].set((odds1 - odds2)[:, 0])
    h = d
    for spec in head_layers[:-1]:
        h = layer(h, spec)
    logits = layer(h, head_layers[-1], relu=False)
    return jax.nn.sigmoid(logits[:, 0:1])


if __name__ == "__main__":
    B = 16           # per-fighter batch (2B = 32 rows through the shared tower)
    INPUT_SIZE = 16  # per-fighter feature size

    key = jax.random.PRNGKey(0)
    k1, k2, k3, k4, kp = jax.random.split(key, 5)
    X1 = jax.random.normal(k1, (B, INPUT_SIZE), jnp.float32)
    X2 = jax.random.normal(k2, (B, INPUT_SIZE), jnp.float32)
    odds1 = jax.random.normal(k3, (B, 1), jnp.float32)
    odds2 = jax.random.normal(k4, (B, 1), jnp.float32)

    params = make_params(kp, INPUT_SIZE)

    # Pack ONCE at "model load" time (hoisted out of the per-call hot path).
    packed = pack_params(params, INPUT_SIZE)

    forward = jax.jit(symmetric_fight_forward)
    out = jax.block_until_ready(forward(X1, X2, odds1, odds2, packed))
    assert out.shape == (B, 1), out.shape

    # Tight check: same packed bf16 weights / folded structure, pure JAX.
    ref_packed = jax.block_until_ready(
        packed_reference(X1, X2, odds1, odds2, packed, INPUT_SIZE))
    assert jnp.allclose(out, ref_packed, atol=2e-3, rtol=0.0), (out, ref_packed)

    # Loose check: exact f32 math of the original module structure (only bf16
    # weight quantization separates the kernel from this).
    ref_f32 = jax.block_until_ready(
        reference_forward(X1, X2, odds1, odds2, params, weight_dtype=jnp.float32))
    assert jnp.allclose(out, ref_f32, atol=5e-2, rtol=0.0), (out, ref_f32)

    print("KERNEL_OK")
</pallas_src>

<mosaic_0001>
module attributes {stable_mosaic.version = 11 : i64} {
  func.func @kernel(%arg0: i32, %arg1: memref<16x16xf32, #tpu.memory_space<vmem>>, %arg2: memref<16x16xf32, #tpu.memory_space<vmem>>, %arg3: memref<16x1xf32, #tpu.memory_space<vmem>>, %arg4: memref<384x512xbf16, #tpu.memory_space<vmem>>, %arg5: memref<640x256xbf16, #tpu.memory_space<vmem>>, %arg6: memref<1040x128xbf16, #tpu.memory_space<vmem>>, %arg7: memref<9x512xf32, #tpu.memory_space<vmem>>, %arg8: memref<16x128xf32, #tpu.memory_space<vmem>>) attributes {dimension_semantics = [#tpu.dimension_semantics<parallel>], iteration_bounds = array<i64: 1>, scalar_prefetch = 0 : i64, scratch_operands = 0 : i64, tpu.core_type = #tpu.core_type<tc>, window_params = [{transform_indices = @transform_0, window_bounds = array<i64: 16, 16>}, {transform_indices = @transform_1, window_bounds = array<i64: 16, 16>}, {transform_indices = @transform_2, window_bounds = array<i64: 16, 1>}, {pipeline_mode = #tpu.pipeline_mode<synchronous>, transform_indices = @transform_3, window_bounds = array<i64: 384, 512>}, {pipeline_mode = #tpu.pipeline_mode<synchronous>, transform_indices = @transform_4, window_bounds = array<i64: 640, 256>}, {pipeline_mode = #tpu.pipeline_mode<synchronous>, transform_indices = @transform_5, window_bounds = array<i64: 1040, 128>}, {pipeline_mode = #tpu.pipeline_mode<synchronous>, transform_indices = @transform_6, window_bounds = array<i64: 9, 512>}, {transform_indices = @transform_7, window_bounds = array<i64: 16, 128>}]} {
    %c0 = arith.constant 0 : index
    %c0_0 = arith.constant 0 : index
    %0 = vector.load %arg1[%c0, %c0_0] : memref<16x16xf32, #tpu.memory_space<vmem>>, vector<16x16xf32>
    %c0_1 = arith.constant 0 : index
    %c0_2 = arith.constant 0 : index
    %1 = vector.load %arg2[%c0_1, %c0_2] : memref<16x16xf32, #tpu.memory_space<vmem>>, vector<16x16xf32>
    %2 = tpu.concatenate %0, %1 in 0 : vector<16x16xf32>, vector<16x16xf32> -> vector<32x16xf32>
    %c0_3 = arith.constant 0 : index
    %c0_4 = arith.constant 0 : index
    %3 = vector.load %arg6[%c0_3, %c0_4] : memref<1040x128xbf16, #tpu.memory_space<vmem>>, vector<16x128xbf16>
    %c0_5 = arith.constant 0 : index
    %c0_6 = arith.constant 0 : index
    %4 = vector.load %arg7[%c0_5, %c0_6] : memref<9x512xf32, #tpu.memory_space<vmem>>, vector<1x128xf32>
    %5 = arith.truncf %2 : vector<32x16xf32> to vector<32x16xbf16>
    %cst = arith.constant dense<0.000000e+00> : vector<32x128xf32>
    %6 = tpu.matmul %5, %3, %cst {dimension_numbers = #tpu.dot_dimension_numbers<[1], [0], [0], [1], [0, 0, 1, 1], [], []>} : vector<32x16xbf16>, vector<16x128xbf16>, vector<32x128xf32> -> vector<32x128xf32>
    %7 = vector.broadcast %4 : vector<1x128xf32> to vector<32x128xf32>
    %8 = arith.addf %6, %7 : vector<32x128xf32>
    %cst_7 = arith.constant 0.000000e+00 : f32
    %9 = vector.broadcast %cst_7 : f32 to vector<32x128xf32>
    %10 = arith.maximumf %8, %9 : vector<32x128xf32>
    %c0_8 = arith.constant 0 : index
    %c0_9 = arith.constant 0 : index
    %11 = vector.load %arg5[%c0_8, %c0_9] : memref<640x256xbf16, #tpu.memory_space<vmem>>, vector<128x256xbf16>
    %c1 = arith.constant 1 : index
    %c0_10 = arith.constant 0 : index
    %12 = vector.load %arg7[%c1, %c0_10] : memref<9x512xf32, #tpu.memory_space<vmem>>, vector<1x256xf32>
    %13 = arith.truncf %10 : vector<32x128xf32> to vector<32x128xbf16>
    %cst_11 = arith.constant dense<0.000000e+00> : vector<32x256xf32>
    %14 = tpu.matmul %13, %11, %cst_11 {dimension_numbers = #tpu.dot_dimension_numbers<[1], [0], [0], [1], [0, 0, 1, 1], [], []>} : vector<32x128xbf16>, vector<128x256xbf16>, vector<32x256xf32> -> vector<32x256xf32>
    %15 = vector.broadcast %12 : vector<1x256xf32> to vector<32x256xf32>
    %16 = arith.addf %14, %15 : vector<32x256xf32>
    %cst_12 = arith.constant 0.000000e+00 : f32
    %17 = vector.broadcast %cst_12 : f32 to vector<32x256xf32>
    %18 = arith.maximumf %16, %17 : vector<32x256xf32>
    %c0_13 = arith.constant 0 : index
    %c0_14 = arith.constant 0 : index
    %19 = vector.load %arg4[%c0_13, %c0_14] : memref<384x512xbf16, #tpu.memory_space<vmem>>, vector<256x512xbf16>
    %c2 = arith.constant 2 : index
    %c0_15 = arith.constant 0 : index
    %20 = vector.load %arg7[%c2, %c0_15] : memref<9x512xf32, #tpu.memory_space<vmem>>, vector<1x512xf32>
    %21 = arith.truncf %18 : vector<32x256xf32> to vector<32x256xbf16>
    %cst_16 = arith.constant dense<0.000000e+00> : vector<32x512xf32>
    %22 = tpu.matmul %21, %19, %cst_16 {dimension_numbers = #tpu.dot_dimension_numbers<[1], [0], [0], [1], [0, 0, 1, 1], [], []>} : vector<32x256xbf16>, vector<256x512xbf16>, vector<32x512xf32> -> vector<32x512xf32>
    %23 = vector.broadcast %20 : vector<1x512xf32> to vector<32x512xf32>
    %24 = arith.addf %22, %23 : vector<32x512xf32>
    %cst_17 = arith.constant 0.000000e+00 : f32
    %25 = vector.broadcast %cst_17 : f32 to vector<32x512xf32>
    %26 = arith.maximumf %24, %25 : vector<32x512xf32>
    %c128 = arith.constant 128 : index
    %c0_18 = arith.constant 0 : index
    %27 = vector.load %arg5[%c128, %c0_18] : memref<640x256xbf16, #tpu.memory_space<vmem>>, vector<512x256xbf16>
    %c3 = arith.constant 3 : index
    %c0_19 = arith.constant 0 : index
    %28 = vector.load %arg7[%c3, %c0_19] : memref<9x512xf32, #tpu.memory_space<vmem>>, vector<1x256xf32>
    %29 = arith.truncf %26 : vector<32x512xf32> to vector<32x512xbf16>
    %cst_20 = arith.constant dense<0.000000e+00> : vector<32x256xf32>
    %30 = tpu.matmul %29, %27, %cst_20 {dimension_numbers = #tpu.dot_dimension_numbers<[1], [0], [0], [1], [0, 0, 1, 1], [], []>} : vector<32x512xbf16>, vector<512x256xbf16>, vector<32x256xf32> -> vector<32x256xf32>
    %31 = vector.broadcast %28 : vector<1x256xf32> to vector<32x256xf32>
    %32 = arith.addf %30, %31 : vector<32x256xf32>
    %cst_21 = arith.constant 0.000000e+00 : f32
    %33 = vector.broadcast %cst_21 : f32 to vector<32x256xf32>
    %34 = arith.maximumf %32, %33 : vector<32x256xf32>
    %c16 = arith.constant 16 : index
    %c0_22 = arith.constant 0 : index
    %35 = vector.load %arg6[%c16, %c0_22] : memref<1040x128xbf16, #tpu.memory_space<vmem>>, vector<256x128xbf16>
    %c4 = arith.constant 4 : index
    %c0_23 = arith.constant 0 : index
    %36 = vector.load %arg7[%c4, %c0_23] : memref<9x512xf32, #tpu.memory_space<vmem>>, vector<1x128xf32>
    %37 = arith.truncf %34 : vector<32x256xf32> to vector<32x256xbf16>
    %cst_24 = arith.constant dense<0.000000e+00> : vector<32x128xf32>
    %38 = tpu.matmul %37, %35, %cst_24 {dimension_numbers = #tpu.dot_dimension_numbers<[1], [0], [0], [1], [0, 0, 1, 1], [], []>} : vector<32x256xbf16>, vector<256x128xbf16>, vector<32x128xf32> -> vector<32x128xf32>
    %39 = vector.broadcast %36 : vector<1x128xf32> to vector<32x128xf32>
    %40 = arith.addf %38, %39 : vector<32x128xf32>
    %cst_25 = arith.constant 0.000000e+00 : f32
    %41 = vector.broadcast %cst_25 : f32 to vector<32x128xf32>
    %42 = arith.maximumf %40, %41 : vector<32x128xf32>
    %43 = vector.extract_strided_slice %42 {offsets = [0, 0], sizes = [16, 128], strides = [1, 1]} : vector<32x128xf32> to vector<16x128xf32>
    %44 = vector.extract_strided_slice %42 {offsets = [16, 0], sizes = [16, 128], strides = [1, 1]} : vector<32x128xf32> to vector<16x128xf32>
    %45 = arith.subf %43, %44 : vector<16x128xf32>
    %46 = tpu.iota {dimensions = array<i32: 1>} : vector<16x128xi32>
    %c127_i32 = arith.constant 127 : i32
    %47 = vector.broadcast %c127_i32 : i32 to vector<16x128xi32>
    %48 = arith.cmpi eq, %46, %47 : vector<16x128xi32>
    %c0_26 = arith.constant 0 : index
    %c0_27 = arith.constant 0 : index
    %49 = vector.load %arg3[%c0_26, %c0_27] : memref<16x1xf32, #tpu.memory_space<vmem>>, vector<16x1xf32>
    %50 = vector.shape_cast %49 : vector<16x1xf32> to vector<16x1xf32>
    %51 = vector.broadcast %50 : vector<16x1xf32> to vector<16x128xf32>
    %52 = arith.select %48, %51, %45 : vector<16x128xi1>, vector<16x128xf32>
    %c256 = arith.constant 256 : index
    %c0_28 = arith.constant 0 : index
    %53 = vector.load %arg4[%c256, %c0_28] : memref<384x512xbf16, #tpu.memory_space<vmem>>, vector<128x512xbf16>
    %c5 = arith.constant 5 : index
    %c0_29 = arith.constant 0 : index
    %54 = vector.load %arg7[%c5, %c0_29] : memref<9x512xf32, #tpu.memory_space<vmem>>, vector<1x512xf32>
    %55 = arith.truncf %52 : vector<16x128xf32> to vector<16x128xbf16>
    %cst_30 = arith.constant dense<0.000000e+00> : vector<16x512xf32>
    %56 = tpu.matmul %55, %53, %cst_30 {dimension_numbers = #tpu.dot_dimension_numbers<[1], [0], [0], [1], [0, 0, 1, 1], [], []>} : vector<16x128xbf16>, vector<128x512xbf16>, vector<16x512xf32> -> vector<16x512xf32>
    %57 = vector.broadcast %54 : vector<1x512xf32> to vector<16x512xf32>
    %58 = arith.addf %56, %57 : vector<16x512xf32>
    %cst_31 = arith.constant 0.000000e+00 : f32
    %59 = vector.broadcast %cst_31 : f32 to vector<16x512xf32>
    %60 = arith.maximumf %58, %59 : vector<16x512xf32>
    %c272 = arith.constant 272 : index
    %c0_32 = arith.constant 0 : index
    %61 = vector.load %arg6[%c272, %c0_32] : memref<1040x128xbf16, #tpu.memory_space<vmem>>, vector<512x128xbf16>
    %c6 = arith.constant 6 : index
    %c0_33 = arith.constant 0 : index
    %62 = vector.load %arg7[%c6, %c0_33] : memref<9x512xf32, #tpu.memory_space<vmem>>, vector<1x128xf32>
    %63 = arith.truncf %60 : vector<16x512xf32> to vector<16x512xbf16>
    %cst_34 = arith.constant dense<0.000000e+00> : vector<16x128xf32>
    %64 = tpu.matmul %63, %61, %cst_34 {dimension_numbers = #tpu.dot_dimension_numbers<[1], [0], [0], [1], [0, 0, 1, 1], [], []>} : vector<16x512xbf16>, vector<512x128xbf16>, vector<16x128xf32> -> vector<16x128xf32>
    %65 = vector.broadcast %62 : vector<1x128xf32> to vector<16x128xf32>
    %66 = arith.addf %64, %65 : vector<16x128xf32>
    %cst_35 = arith.constant 0.000000e+00 : f32
    %67 = vector.broadcast %cst_35 : f32 to vector<16x128xf32>
    %68 = arith.maximumf %66, %67 : vector<16x128xf32>
    %c784 = arith.constant 784 : index
    %c0_36 = arith.constant 0 : index
    %69 = vector.load %arg6[%c784, %c0_36] : memref<1040x128xbf16, #tpu.memory_space<vmem>>, vector<128x128xbf16>
    %c7 = arith.constant 7 : index
    %c0_37 = arith.constant 0 : index
    %70 = vector.load %arg7[%c7, %c0_37] : memref<9x512xf32, #tpu.memory_space<vmem>>, vector<1x128xf32>
    %71 = arith.truncf %68 : vector<16x128xf32> to vector<16x128xbf16>
    %cst_38 = arith.constant dense<0.000000e+00> : vector<16x128xf32>
    %72 = tpu.matmul %71, %69, %cst_38 {dimension_numbers = #tpu.dot_dimension_numbers<[1], [0], [0], [1], [0, 0, 1, 1], [], []>} : vector<16x128xbf16>, vector<128x128xbf16>, vector<16x128xf32> -> vector<16x128xf32>
    %73 = vector.broadcast %70 : vector<1x128xf32> to vector<16x128xf32>
    %74 = arith.addf %72, %73 : vector<16x128xf32>
    %cst_39 = arith.constant 0.000000e+00 : f32
    %75 = vector.broadcast %cst_39 : f32 to vector<16x128xf32>
    %76 = arith.maximumf %74, %75 : vector<16x128xf32>
    %c912 = arith.constant 912 : index
    %c0_40 = arith.constant 0 : index
    %77 = vector.load %arg6[%c912, %c0_40] : memref<1040x128xbf16, #tpu.memory_space<vmem>>, vector<128x128xbf16>
    %c8 = arith.constant 8 : index
    %c0_41 = arith.constant 0 : index
    %78 = vector.load %arg7[%c8, %c0_41] : memref<9x512xf32, #tpu.memory_space<vmem>>, vector<1x128xf32>
    %79 = arith.truncf %76 : vector<16x128xf32> to vector<16x128xbf16>
    %cst_42 = arith.constant dense<0.000000e+00> : vector<16x128xf32>
    %80 = tpu.matmul %79, %77, %cst_42 {dimension_numbers = #tpu.dot_dimension_numbers<[1], [0], [0], [1], [0, 0, 1, 1], [], []>} : vector<16x128xbf16>, vector<128x128xbf16>, vector<16x128xf32> -> vector<16x128xf32>
    %81 = vector.broadcast %78 : vector<1x128xf32> to vector<16x128xf32>
    %82 = arith.addf %80, %81 : vector<16x128xf32>
    %83 = arith.negf %82 : vector<16x128xf32>
    %84 = math.exp %83 : vector<16x128xf32>
    %cst_43 = arith.constant 1.000000e+00 : f32
    %85 = vector.broadcast %cst_43 : f32 to vector<16x128xf32>
    %86 = arith.addf %85, %84 : vector<16x128xf32>
    %87 = arith.divf %85, %86 : vector<16x128xf32>
    %c0_44 = arith.constant 0 : index
    %c0_45 = arith.constant 0 : index
    %88 = vector.load %arg8[%c0_44, %c0_45] : memref<16x128xf32, #tpu.memory_space<vmem>>, vector<16x128xf32>
    tpu.vector_store %arg8[%c0_44, %c0_45], %87 {strides = array<i32>} : memref<16x128xf32, #tpu.memory_space<vmem>>, vector<16x128xf32>,
    return
  }
  func.func @transform_0(%arg0: i32) -> (i32, i32) {
    %c0_i32 = arith.constant 0 : i32
    %c0_i32_0 = arith.constant 0 : i32
    return %arg0, %c0_i32 : i32, i32
  }
  func.func @transform_1(%arg0: i32) -> (i32, i32) {
    %c0_i32 = arith.constant 0 : i32
    %c0_i32_0 = arith.constant 0 : i32
    return %arg0, %c0_i32 : i32, i32
  }
  func.func @transform_2(%arg0: i32) -> (i32, i32) {
    %c0_i32 = arith.constant 0 : i32
    %c0_i32_0 = arith.constant 0 : i32
    return %arg0, %c0_i32 : i32, i32
  }
  func.func @transform_3(%arg0: i32) -> (i32, i32) {
    %c0_i32 = arith.constant 0 : i32
    %c0_i32_0 = arith.constant 0 : i32
    %c0_i32_1 = arith.constant 0 : i32
    return %c0_i32, %c0_i32_0 : i32, i32
  }
  func.func @transform_4(%arg0: i32) -> (i32, i32) {
    %c0_i32 = arith.constant 0 : i32
    %c0_i32_0 = arith.constant 0 : i32
    %c0_i32_1 = arith.constant 0 : i32
    return %c0_i32, %c0_i32_0 : i32, i32
  }
  func.func @transform_5(%arg0: i32) -> (i32, i32) {
    %c0_i32 = arith.constant 0 : i32
    %c0_i32_0 = arith.constant 0 : i32
    %c0_i32_1 = arith.constant 0 : i32
    return %c0_i32, %c0_i32_0 : i32, i32
  }
  func.func @transform_6(%arg0: i32) -> (i32, i32) {
    %c0_i32 = arith.constant 0 : i32
    %c0_i32_0 = arith.constant 0 : i32
    %c0_i32_1 = arith.constant 0 : i32
    return %c0_i32, %c0_i32_0 : i32, i32
  }
  func.func @transform_7(%arg0: i32) -> (i32, i32) {
    %c0_i32 = arith.constant 0 : i32
    %c0_i32_0 = arith.constant 0 : i32
    return %arg0, %c0_i32 : i32, i32
  }
}

</mosaic_0001>

<bundles_post_ra>
// kernel: sub.1
= control target key start
LH: loop header
LB: loop body
LE: loop exit
PB: predicated region body
PF: predicated region fallthrough
CT: control target
= control target key end

     0   :  { %s34_s0 = inlined_call_operand.vmem [shape: f32[16,1], index: 0, kind: input, shape index: {}]   ;;  %s35_s1 = inlined_call_operand.vmem [shape: f32[16,1], index: 1, kind: input, shape index: {}]   ;;  %s36_s2 = inlined_call_operand.vmem [shape: f32[16,1], index: 2, kind: output, shape index: {}]  }
   0x1   :  { %v3_v0 = vld [vmem:[%s34_s0] sm:$0x1] }
   0x2   :  { %v4_v1 = vld [vmem:[%s35_s1] sm:$0x1] }
   0x3   :  { %v7_v2 = vsub.f32 %v3_v0, %v4_v1 }
   0x5   :  { %9 = vst [vmem:[%s36_s2] sm:$0x1] %v7_v2 }

// kernel: symmetric_fight_forward.1
= control target key start
LH: loop header
LB: loop body
LE: loop exit
PB: predicated region body
PF: predicated region fallthrough
CT: control target
= control target key end

     0   :  { %12 = vsyncpa [#allocation3], 0  ;;  %s3557_s0 = inlined_call_operand.vmem [shape: f32[16,16], index: 0, kind: input, shape index: {}]   ;;  %s3558_s1 = inlined_call_operand.hbm [shape: f32[16,16], index: 1, kind: input, shape index: {}]   ;;  %s3559_s2 = inlined_call_operand.vmem [shape: f32[16,1], index: 2, kind: input, shape index: {}]   ;;  %s3560_s3 = inlined_call_operand.hbm [shape: bf16[384,512], index: 3, kind: input, shape index: {}]   ;;  %s3561_s4 = inlined_call_operand.hbm [shape: bf16[640,256], index: 4, kind: input, shape index: {}]   ;;  %s3562_s5 = inlined_call_operand.hbm [shape: bf16[1040,128], index: 5, kind: input, shape index: {}]   ;;  %s3563_s6 = inlined_call_operand.hbm [shape: f32[9,512], index: 6, kind: input, shape index: {}]   ;;  %s3564_s7 = inlined_call_operand.vmem [shape: f32[16,128], index: 7, kind: output, shape index: {}]  }
   0x1   :  { %13 = vsyncpa [#allocation5], 0 }
   0x2   :  { %14 = vsyncpa [#allocation8], 0  ;;  %s3366_s24 = smov [#allocation4]   ;;  %s3250_s28 = scalar_lea.hbm %s3560_s3, 12288 }
   0x3   :  { %s36_s25 = sshll.u32 %s3366_s24, 4  ;;  %p3251_p0 = scmp.ne.s32.totalorder %s3560_s3, %s3250_s28  ;;  %s37_s25 = int_to_ptr.vmem [resolvable:$true] %s36_s25 }
   0x4   :  { %p3254_p1 = scmp.lt.u32.totalorder %s3250_s28, %s3560_s3 }
   0x6   :  { %p3256_p2 = pnand %p3254_p1, %p3251_p0 }
   0x8   :  { %3259 = shalt.err (!%p3256_p2)
}
   0x9   :  { %s3260_s10 = scalar_lea.vmem %s37_s25, 12288  ;;  %p3265_p4 = scmp.lt.s32.totalorder %s37_s25, %s37_s25 }
   0xa   :  { %p3261_p3 = scmp.ne.s32.totalorder %s37_s25, %s3260_s10  ;;  %p3266_p5 = scmp.lt.s32.totalorder %s3260_s10, %s3260_s10 }
   0xc   :  { %p3267_p6 = por %p3266_p5, %p3265_p4 }
   0xe   :  { %p3268_p7 = pnand %p3267_p6, %p3261_p3 }
  0x10   :  { %3271 = shalt.err (!%p3268_p7)
}
  0x11   :  { %s3367_s11 = smov 256   ;;  %s3368_s12 = smov 16  }
  0x12   :  { %42 = dma.hbm_to_vmem [thread:$0]  %s3560_s3, 12288, %s37_s25, [#allocation5], %s3367_s11, %s3367_s11, %s3368_s12  }
  0x13   :  { %s3369_s15 = smov [#allocation7]   ;;  %s3272_s19 = scalar_lea.hbm %s3562_s5, 8320 }
  0x14   :  { %s60_s16 = sshll.u32 %s3369_s15, 4  ;;  %p3273_p8 = scmp.ne.s32.totalorder %s3562_s5, %s3272_s19  ;;  %s61_s16 = int_to_ptr.vmem [resolvable:$true] %s60_s16 }
  0x15   :  { %p3276_p9 = scmp.lt.u32.totalorder %s3272_s19, %s3562_s5 }
  0x17   :  { %p3278_p10 = pnand %p3276_p9, %p3273_p8 }
  0x19   :  { %3281 = shalt.err (!%p3278_p10)
}
  0x1a   :  { %s3282_s24 = scalar_lea.vmem %s61_s16, 8320  ;;  %p3287_p12 = scmp.lt.s32.totalorder %s61_s16, %s61_s16 }
  0x1b   :  { %p3283_p11 = scmp.ne.s32.totalorder %s61_s16, %s3282_s24  ;;  %p3288_p13 = scmp.lt.s32.totalorder %s3282_s24, %s3282_s24 }
  0x1d   :  { %p3289_p0 = por %p3288_p13, %p3287_p12 }
  0x1f   :  { %p3290_p1 = pnand %p3289_p0, %p3283_p11 }
  0x21   :  { %3293 = shalt.err (!%p3290_p1)
}
  0x22   :  { %s3370_s3 = smov 64   ;;  %s3371_s25 = smov 4  }
  0x23   :  { %66 = dma.hbm_to_vmem [thread:$0]  %s3562_s5, 8320, %s61_s16, [#allocation8], %s3370_s3, %s3370_s3, %s3371_s25  }
  0x24   :  { %s3372_s28 = smov [#allocation2]   ;;  %s3294_s9 = scalar_lea.hbm %s3558_s1, 256 }
  0x25   :  { %s22_s29 = sshll.u32 %s3372_s28, 4  ;;  %p3295_p2 = scmp.ne.s32.totalorder %s3558_s1, %s3294_s9  ;;  %s23_s29 = int_to_ptr.vmem [resolvable:$true] %s22_s29 }
  0x26   :  { %p3298_p3 = scmp.lt.u32.totalorder %s3294_s9, %s3558_s1 }
  0x28   :  { %p3300_p4 = pnand %p3298_p3, %p3295_p2 }
  0x2a   :  { %3303 = shalt.err (!%p3300_p4)
}
  0x2b   :  { %s3304_s14 = scalar_lea.vmem %s23_s29, 256  ;;  %p3309_p6 = scmp.lt.s32.totalorder %s23_s29, %s23_s29 }
  0x2c   :  { %p3305_p5 = scmp.ne.s32.totalorder %s23_s29, %s3304_s14  ;;  %p3310_p7 = scmp.lt.s32.totalorder %s3304_s14, %s3304_s14 }
  0x2e   :  { %p3311_p8 = por %p3310_p7, %p3309_p6 }
  0x30   :  { %p3312_p9 = pnand %p3311_p8, %p3305_p5 }
  0x32   :  { %3315 = shalt.err (!%p3312_p9)
}
  0x33   :  { %s3373_s5 = smov 128   ;;  %s3374_s15 = smov 8  }
  0x34   :  { %28 = dma.hbm_to_vmem [thread:$0]  %s3558_s1, 256, %s23_s29, [#allocation3], %s3373_s5, %s3373_s5, %s3374_s15  }
  0x35   :  { %s3375_s18 = smov [#allocation6]   ;;  %s3376_s20 = smov [#allocation9]  }
  0x36   :  { %s48_s19 = sshll.u32 %s3375_s18, 4  ;;  %s72_s21 = sshll.u32 %s3376_s20, 4  ;;  %s49_s19 = int_to_ptr.vmem [resolvable:$true] %s48_s19  ;;  %s73_s21 = int_to_ptr.vmem [resolvable:$true] %s72_s21 }
  0x37   :  { %s3316_s24 = scalar_lea.hbm %s3561_s4, 10240 }
  0x38   :  { %p3317_p10 = scmp.ne.s32.totalorder %s3561_s4, %s3316_s24  ;;  %p3320_p11 = scmp.lt.u32.totalorder %s3316_s24, %s3561_s4 }
  0x3a   :  { %p3322_p12 = pnand %p3320_p11, %p3317_p10 }
  0x3c   :  { %3325 = shalt.err (!%p3322_p12)
}
  0x3d   :  { %s3326_s1 = scalar_lea.vmem %s49_s19, 10240  ;;  %p3331_p0 = scmp.lt.s32.totalorder %s49_s19, %s49_s19 }
  0x3e   :  { %p3327_p13 = scmp.ne.s32.totalorder %s49_s19, %s3326_s1  ;;  %p3332_p1 = scmp.lt.s32.totalorder %s3326_s1, %s3326_s1 }
  0x40   :  { %p3333_p2 = por %p3332_p1, %p3331_p0 }
  0x42   :  { %p3334_p3 = pnand %p3333_p2, %p3327_p13 }
  0x44   :  { %3337 = shalt.err (!%p3334_p3)
}
  0x45   :  { %54 = dma.hbm_to_vmem [thread:$0]  %s3561_s4, 10240, %s49_s19, [#allocation5], %s3373_s5, %s3373_s5, %s3374_s15  }
  0x46   :  { %s3338_s9 = scalar_lea.hbm %s3563_s6, 1024 }
  0x47   :  { %p3339_p4 = scmp.ne.s32.totalorder %s3563_s6, %s3338_s9  ;;  %p3342_p5 = scmp.lt.u32.totalorder %s3338_s9, %s3563_s6 }
  0x49   :  { %p3344_p6 = pnand %p3342_p5, %p3339_p4 }
  0x4b   :  { %3347 = shalt.err (!%p3344_p6)
}
  0x4c   :  { %s3348_s14 = scalar_lea.vmem %s73_s21, 1024  ;;  %p3353_p8 = scmp.lt.s32.totalorder %s73_s21, %s73_s21 }
  0x4d   :  { %p3349_p7 = scmp.ne.s32.totalorder %s73_s21, %s3348_s14  ;;  %p3354_p9 = scmp.lt.s32.totalorder %s3348_s14, %s3348_s14 }
  0x4f   :  { %p3355_p10 = por %p3354_p9, %p3353_p8 }
  0x51   :  { %p3356_p11 = pnand %p3355_p10, %p3349_p7 }
  0x53   :  { %3359 = shalt.err (!%p3356_p11)
}
  0x54   :  { %s3377_s4 = smov 512   ;;  %s3378_s5 = smov 32  }
  0x55   :  { %78 = dma.hbm_to_vmem [thread:$0]  %s3563_s6, 1024, %s73_s21, [#allocation8], %s3377_s4, %s3377_s4, %s3378_s5  }
  0x56   :  { %3360 = dma.done.wait [#allocation3], 256  }
  0x57   :  { %3361 = vsyncadd [#allocation3], 4294967040 }
  0x58   :  { %3362 = dma.done.wait [#allocation5], 22528  }
  0x59   :  { %3363 = vsyncadd [#allocation5], 4294944768 }
  0x5a   :  { %3364 = dma.done.wait [#allocation8], 9344  }
  0x5b   :  { %3365 = vsyncadd [#allocation8], 4294957952  ;;  %v2913_v0 = vld [vmem:[#allocation7] sm:$0xff]   ;;  %v95_v1 = vld [vmem:[%s3557_s0] sm:$0xff]  ;;  %vm110_vm0 = vcmask 130048   ;;  %v3379_v23 = vmov 0  }
  0x5c   :  { %v96_v2 = vld [vmem:[%s3557_s0 + $0x8] sm:$0xff]  ;;  %v97_v3 = vld [vmem:[#allocation2] sm:$0xff]  ;;  %2829 = vmatprep.subr.bf16.mxu0 %v2913_v0  ;;  %v2914_v7 = vld [vmem:[#allocation6 + $0x4] ss:$8 sps:$4 sm:$0xff]   ;;  %313 = vmatprep.mubr.bf16.mxu1 %v3379_v23  ;;  %vm3381_vm2 = vmmov 0  }
  0x5d   :  { %v102_v4 = vpack.c.bf16 %v96_v2, %v95_v1  ;;  %v98_v5 = vld [vmem:[#allocation2 + $0x8] sm:$0xff]  ;;  %2830 = vmatpush3.bf16.msra.mxu0 %v2913_v0  ;;  %v2916_v8 = vld [vmem:[#allocation6] ss:$8 sps:$4 sm:$0xff]   ;;  %281 = vmatprep.subr.bf16.mxu1 %v2914_v7  ;;  %v2920_v11 = vld [vmem:[#allocation6 + $0x24] ss:$8 sps:$4 sm:$0xff]  }
  0x5e   :  { %v103_v6 = vpack.c.bf16 %v98_v5, %v97_v3  ;;  %v2917_v9 = vld [vmem:[#allocation6 + $0x14] ss:$8 sps:$4 sm:$0xff]   ;;  %282 = vmatpush1.bf16.msra.mxu1 %v2916_v8  ;;  %v2919_v10 = vld [vmem:[#allocation6 + $0x10] ss:$8 sps:$4 sm:$0xff]   ;;  %v2922_v12 = vld [vmem:[#allocation6 + $0x20] ss:$8 sps:$4 sm:$0xff]   ;;  %2907 = vset.pattern.permute.xlu0 %v3379_v23 }
  0x5f   :  { %2831 = vmatprep.mubr.msk.bf16.mxu0 %vm110_vm0, %v102_v4  ;;  %283 = vmatprep.subr.bf16.mxu1 %v2917_v9  ;;  %v2923_v13 = vld [vmem:[#allocation6 + $0x34] ss:$8 sps:$4 sm:$0xff]   ;;  %v2925_v14 = vld [vmem:[#allocation6 + $0x30] ss:$8 sps:$4 sm:$0xff]   ;;  %v2926_v15 = vld [vmem:[#allocation6 + $0x44] ss:$8 sps:$4 sm:$0xff]  }
  0x60   :  { %2832 = vmatmul.mubr.msk.bf16.vlgmr.msra.gmra.mrb[0].mxu0 %vm110_vm0, %v103_v6  ;;  %v2928_v16 = vld [vmem:[#allocation6 + $0x40] ss:$8 sps:$4 sm:$0xff]   ;;  %v2929_v17 = vld [vmem:[#allocation6 + $0x54] ss:$8 sps:$4 sm:$0xff]   ;;  %v2931_v18 = vld [vmem:[#allocation6 + $0x50] ss:$8 sps:$4 sm:$0xff]  }
  0x61   :  { %v2932_v19 = vld [vmem:[#allocation6 + $0x64] ss:$8 sps:$4 sm:$0xff]   ;;  %v2934_v20 = vld [vmem:[#allocation6 + $0x60] ss:$8 sps:$4 sm:$0xff]   ;;  %v2935_v21 = vld [vmem:[#allocation6 + $0x74] ss:$8 sps:$4 sm:$0xff]  }
  0x62   :  { %284 = vmatpush1.bf16.msra.mxu1 %v2919_v10  ;;  %v2937_v22 = vld [vmem:[#allocation6 + $0x70] ss:$8 sps:$4 sm:$0xff]   ;;  %v2940_v25 = vld [vmem:[#allocation4 + $0x4] ss:$16 sps:$4 sm:$0xff]   ;;  %v2943_v26 = vld [vmem:[#allocation4 + $0xc] ss:$16 sps:$4 sm:$0xff]  }
  0x63   :  { %285 = vmatprep.subr.bf16.mxu1 %v2920_v11  ;;  %v2938_v24 = vld [vmem:[#allocation4] ss:$16 sps:$4 sm:$0xff]   ;;  %v2946_v27 = vld [vmem:[#allocation4 + $0x24] ss:$16 sps:$4 sm:$0xff]   ;;  %753 = vmatprep.subr.bf16.mxu0 %v2940_v25  ;;  %v101_v53 = vld [vmem:[#allocation9] ss:$0 sm:$0xff] }
  0x64   :  { %754 = vmatpush1.bf16.msra.mxu0 %v2938_v24  ;;  %v2944_v28 = vld [vmem:[#allocation4 + $0x20] ss:$16 sps:$4 sm:$0xff]   ;;  %v2952_v29 = vld [vmem:[#allocation4 + $0x44] ss:$16 sps:$4 sm:$0xff]   ;;  %v2941_v3 = vld [vmem:[#allocation4 + $0x8] ss:$16 sps:$4 sm:$0xff]  }
  0x65   :  { %755 = vmatprep.subr.bf16.mxu0 %v2946_v27  ;;  %v2950_v30 = vld [vmem:[#allocation4 + $0x40] ss:$16 sps:$4 sm:$0xff]   ;;  %v2958_v31 = vld [vmem:[#allocation4 + $0x64] ss:$16 sps:$4 sm:$0xff]   ;;  %v2949_v5 = vld [vmem:[#allocation4 + $0x2c] ss:$16 sps:$4 sm:$0xff]  }
  0x66   :  { %286 = vmatpush1.bf16.msra.mxu1 %v2922_v12  ;;  %v2956_v32 = vld [vmem:[#allocation4 + $0x60] ss:$16 sps:$4 sm:$0xff]   ;;  %v2964_v33 = vld [vmem:[#allocation4 + $0x84] ss:$16 sps:$4 sm:$0xff]   ;;  %v2947_v6 = vld [vmem:[#allocation4 + $0x28] ss:$16 sps:$4 sm:$0xff]  }
  0x67   :  { %287 = vmatprep.subr.bf16.mxu1 %v2923_v13  ;;  %v2962_v34 = vld [vmem:[#allocation4 + $0x80] ss:$16 sps:$4 sm:$0xff]   ;;  %v2970_v35 = vld [vmem:[#allocation4 + $0xa4] ss:$16 sps:$4 sm:$0xff]   ;;  %v2955_v7 = vld [vmem:[#allocation4 + $0x4c] ss:$16 sps:$4 sm:$0xff]  }
  0x68   :  { %756 = vmatpush1.bf16.msra.mxu0 %v2944_v28  ;;  %v2968_v36 = vld [vmem:[#allocation4 + $0xa0] ss:$16 sps:$4 sm:$0xff]   ;;  %v2976_v37 = vld [vmem:[#allocation4 + $0xc4] ss:$16 sps:$4 sm:$0xff]   ;;  %v2953_v8 = vld [vmem:[#allocation4 + $0x48] ss:$16 sps:$4 sm:$0xff]  }
  0x69   :  { %757 = vmatprep.subr.bf16.mxu0 %v2952_v29  ;;  %v2974_v38 = vld [vmem:[#allocation4 + $0xc0] ss:$16 sps:$4 sm:$0xff]   ;;  %v2982_v39 = vld [vmem:[#allocation4 + $0xe4] ss:$16 sps:$4 sm:$0xff]   ;;  %v2961_v9 = vld [vmem:[#allocation4 + $0x6c] ss:$16 sps:$4 sm:$0xff]  }
  0x6a   :  { %288 = vmatpush1.bf16.msra.mxu1 %v2925_v14  ;;  %v2980_v40 = vld [vmem:[#allocation4 + $0xe0] ss:$16 sps:$4 sm:$0xff]   ;;  %v2988_v41 = vld [vmem:[#allocation4 + $0x104] ss:$16 sps:$4 sm:$0xff]   ;;  %v2959_v10 = vld [vmem:[#allocation4 + $0x68] ss:$16 sps:$4 sm:$0xff]  }
  0x6b   :  { %289 = vmatprep.subr.bf16.mxu1 %v2926_v15  ;;  %v2986_v42 = vld [vmem:[#allocation4 + $0x100] ss:$16 sps:$4 sm:$0xff]   ;;  %v2994_v43 = vld [vmem:[#allocation4 + $0x124] ss:$16 sps:$4 sm:$0xff]   ;;  %v2967_v11 = vld [vmem:[#allocation4 + $0x8c] ss:$16 sps:$4 sm:$0xff]  }
  0x6c   :  { %758 = vmatpush1.bf16.msra.mxu0 %v2950_v30  ;;  %v2992_v44 = vld [vmem:[#allocation4 + $0x120] ss:$16 sps:$4 sm:$0xff]   ;;  %v3000_v45 = vld [vmem:[#allocation4 + $0x144] ss:$16 sps:$4 sm:$0xff]   ;;  %v2965_v12 = vld [vmem:[#allocation4 + $0x88] ss:$16 sps:$4 sm:$0xff]  }
  0x6d   :  { %759 = vmatprep.subr.bf16.mxu0 %v2958_v31  ;;  %v2998_v46 = vld [vmem:[#allocation4 + $0x140] ss:$16 sps:$4 sm:$0xff]   ;;  %v3006_v47 = vld [vmem:[#allocation4 + $0x164] ss:$16 sps:$4 sm:$0xff]   ;;  %v2973_v13 = vld [vmem:[#allocation4 + $0xac] ss:$16 sps:$4 sm:$0xff]  }
  0x6e   :  { %290 = vmatpush1.bf16.msra.mxu1 %v2928_v16  ;;  %v3004_v48 = vld [vmem:[#allocation4 + $0x160] ss:$16 sps:$4 sm:$0xff]   ;;  %v3012_v49 = vld [vmem:[#allocation4 + $0x184] ss:$16 sps:$4 sm:$0xff]   ;;  %v2971_v14 = vld [vmem:[#allocation4 + $0xa8] ss:$16 sps:$4 sm:$0xff]  }
  0x6f   :  { %291 = vmatprep.subr.bf16.mxu1 %v2929_v17  ;;  %v3010_v50 = vld [vmem:[#allocation4 + $0x180] ss:$16 sps:$4 sm:$0xff]   ;;  %v3018_v51 = vld [vmem:[#allocation4 + $0x1a4] ss:$16 sps:$4 sm:$0xff]   ;;  %v2979_v15 = vld [vmem:[#allocation4 + $0xcc] ss:$16 sps:$4 sm:$0xff]  }
  0x70   :  { %760 = vmatpush1.bf16.msra.mxu0 %v2956_v32  ;;  %v3016_v52 = vld [vmem:[#allocation4 + $0x1a0] ss:$16 sps:$4 sm:$0xff]   ;;  %v2977_v16 = vld [vmem:[#allocation4 + $0xc8] ss:$16 sps:$4 sm:$0xff]   ;;  %v2985_v17 = vld [vmem:[#allocation4 + $0xec] ss:$16 sps:$4 sm:$0xff]  }
  0x71   :  { %761 = vmatprep.subr.bf16.mxu0 %v2964_v33  ;;  %v3003_v24 = vld [vmem:[#allocation4 + $0x14c] ss:$16 sps:$4 sm:$0xff]   ;;  %v3001_v25 = vld [vmem:[#allocation4 + $0x148] ss:$16 sps:$4 sm:$0xff]   ;;  %v3024_v32 = vld [vmem:[#allocation4 + $0x1c4] ss:$16 sps:$4 sm:$0xff]  }
  0x72   :  { %292 = vmatpush1.bf16.msra.mxu1 %v2931_v18  ;;  %v2983_v18 = vld [vmem:[#allocation4 + $0xe8] ss:$16 sps:$4 sm:$0xff]   ;;  %v3015_v28 = vld [vmem:[#allocation4 + $0x18c] ss:$16 sps:$4 sm:$0xff]  }
  0x73   :  { %293 = vmatprep.subr.bf16.mxu1 %v2932_v19  ;;  %v2991_v19 = vld [vmem:[#allocation4 + $0x10c] ss:$16 sps:$4 sm:$0xff]   ;;  %v3007_v27 = vld [vmem:[#allocation4 + $0x168] ss:$16 sps:$4 sm:$0xff]  }
  0x74   :  { %762 = vmatpush1.bf16.msra.mxu0 %v2962_v34  ;;  %v3013_v29 = vld [vmem:[#allocation4 + $0x188] ss:$16 sps:$4 sm:$0xff]   ;;  %v3021_v30 = vld [vmem:[#allocation4 + $0x1ac] ss:$16 sps:$4 sm:$0xff]   ;;  %v3022_v34 = vld [vmem:[#allocation4 + $0x1c0] ss:$16 sps:$4 sm:$0xff]  }
  0x75   :  { %763 = vmatprep.subr.bf16.mxu0 %v2970_v35  ;;  %v3019_v31 = vld [vmem:[#allocation4 + $0x1a8] ss:$16 sps:$4 sm:$0xff]   ;;  %v3027_v33 = vld [vmem:[#allocation4 + $0x1cc] ss:$16 sps:$4 sm:$0xff]  }
  0x76   :  { %294 = vmatpush1.bf16.msra.mxu1 %v2934_v20  ;;  %v2989_v20 = vld [vmem:[#allocation4 + $0x108] ss:$16 sps:$4 sm:$0xff]  }
  0x77   :  { %295 = vmatprep.subr.bf16.mxu1 %v2935_v21  ;;  %v2997_v21 = vld [vmem:[#allocation4 + $0x12c] ss:$16 sps:$4 sm:$0xff]   ;;  %v3025_v35 = vld [vmem:[#allocation4 + $0x1c8] ss:$16 sps:$4 sm:$0xff]  }
  0x78   :  { %764 = vmatpush1.bf16.msra.mxu0 %v2968_v36  ;;  %v3030_v36 = vld [vmem:[#allocation4 + $0x1e4] ss:$16 sps:$4 sm:$0xff]  }
  0x79   :  { %765 = vmatprep.subr.bf16.mxu0 %v2976_v37  ;;  %v3033_v37 = vld [vmem:[#allocation4 + $0x1ec] ss:$16 sps:$4 sm:$0xff]  }
  0x7a   :  { %296 = vmatpush1.bf16.msra.mxu1 %v2937_v22  ;;  %v2995_v22 = vld [vmem:[#allocation4 + $0x128] ss:$16 sps:$4 sm:$0xff]  }
  0x7b   :  { %806 = vmatprep.subr.bf16.mxu1 %v2943_v26  ;;  %v3009_v26 = vld [vmem:[#allocation4 + $0x16c] ss:$16 sps:$4 sm:$0xff]  }
  0x7c   :  { %766 = vmatpush1.bf16.msra.mxu0 %v2974_v38  ;;  %v3028_v38 = vld [vmem:[#allocation4 + $0x1e0] ss:$16 sps:$4 sm:$0xff]  }
  0x7d   :  { %767 = vmatprep.subr.bf16.mxu0 %v2982_v39  ;;  %v3031_v39 = vld [vmem:[#allocation4 + $0x1e8] ss:$16 sps:$4 sm:$0xff]  }
  0x80   :  { %768 = vmatpush1.bf16.msra.mxu0 %v2980_v40  ;;  %v3036_v40 = vld [vmem:[#allocation6 + $0x84] ss:$8 sps:$4 sm:$0xff]  }
  0x81   :  { %769 = vmatprep.subr.bf16.mxu0 %v2988_v41  ;;  %v191_v41 = vlaneseq }
  0x84   :  { %770 = vmatpush1.bf16.msra.mxu0 %v2986_v42  ;;  %v3492_v42 = vshrl.u32 %v191_v41, 7 }
  0x85   :  { %771 = vmatprep.subr.bf16.mxu0 %v2994_v43 }
  0x86   :  { %v3495_v43 = vsub.s32 0, %v3492_v42 }
  0x88   :  { %772 = vmatpush1.bf16.msra.mxu0 %v2992_v44  ;;  %v187_v44 = vld [vmem:[#allocation9 + $0x1] ss:$8 sm:$0x3] }
  0x89   :  { %773 = vmatprep.subr.bf16.mxu0 %v3000_v45  ;;  %v3498_v45 = vsub.s32 1, %v3492_v42 }
  0x8c   :  { %774 = vmatpush1.bf16.msra.mxu0 %v2998_v46  ;;  %v194_v46 = vrot.slane %v187_v44, %v3495_v43 }
  0x8d   :  { %775 = vmatprep.subr.bf16.mxu0 %v3006_v47  ;;  %v198_v47 = vrot.slane %v187_v44, %v3498_v45  ;;  %v3076_v44 = vld [vmem:[#allocation6 + $0x160] ss:$8 sps:$4 sm:$0xff]  }
  0x90   :  { %776 = vmatpush1.bf16.msra.mxu0 %v3004_v48 }
  0x91   :  { %777 = vmatprep.subr.bf16.mxu0 %v3012_v49 }
  0x94   :  { %778 = vmatpush1.bf16.msra.mxu0 %v3010_v50 }
  0x95   :  { %779 = vmatprep.subr.bf16.mxu0 %v3018_v51 }
  0x98   :  { %780 = vmatpush1.bf16.msra.mxu0 %v3016_v52 }
  0x99   :  { %781 = vmatprep.subr.bf16.mxu0 %v3024_v32  ;;  %v3066_v32 = vld [vmem:[#allocation6 + $0x124] ss:$8 sps:$4 sm:$0xff]  }
  0x9c   :  { %782 = vmatpush1.bf16.msra.mxu0 %v3022_v34  ;;  %v3069_v34 = vld [vmem:[#allocation6 + $0x134] ss:$8 sps:$4 sm:$0xff]  }
  0x9d   :  { %783 = vmatprep.subr.bf16.mxu0 %v3030_v36  ;;  %v3072_v36 = vld [vmem:[#allocation6 + $0x144] ss:$8 sps:$4 sm:$0xff]  }
  0xa0   :  { %784 = vmatpush1.bf16.msra.mxu0 %v3028_v38  ;;  %v3075_v38 = vld [vmem:[#allocation6 + $0x154] ss:$8 sps:$4 sm:$0xff]  }
  0xa1   :  { %1280 = vmatprep.subr.bf16.mxu0 %v3036_v40  ;;  %v3078_v40 = vld [vmem:[#allocation6 + $0x164] ss:$8 sps:$4 sm:$0xff]  }
 0x133   :  { %v2833_v54 = vpop.f32.mrb[0].mxu0 }
 0x134   :  { %v160_v55 = vadd.f32 %v2833_v54, %v101_v53  ;;  %v151_v56 = vpop.f32.mrb[1].mxu0 }
 0x135   :  { %v152_v57 = vadd.f32 %v151_v56, %v101_v53  ;;  %v2834_v58 = vpop.f32.mrb[2].mxu0 }
 0x136   :  { %v163_v59 = vadd.f32 %v2834_v58, %v101_v53  ;;  %v154_v60 = vpop.f32.mrb[3].mxu0  ;;  %v168_v62 = vmax.f32 %v160_v55, 0.0 }
 0x137   :  { %v155_v61 = vadd.f32 %v154_v60, %v101_v53  ;;  %v166_v0 = vmax.f32 %v152_v57, 0.0 }
 0x138   :  { %v169_v63 = vmax.f32 %v163_v59, 0.0 }
 0x139   :  { %v167_v1 = vmax.f32 %v155_v61, 0.0 }
 0x13a   :  { %v189_v2 = vpack.c.bf16 %v169_v63, %v168_v62  ;;  %v3034_v63 = vld [vmem:[#allocation6 + $0x80] ss:$8 sps:$4 sm:$0xff]  }
 0x13b   :  { %v188_v4 = vpack.c.bf16 %v167_v1, %v166_v0 }
 0x13d   :  { %314 = vmatmul.mubr.bf16.vlgmr.msra.gmra.mrb[0].mxu1 %v188_v4 }
 0x13e   :  { %323 = vmatprep.mubr.bf16.mxu1 %v3379_v23  ;;  %807 = vmatpush1.bf16.msra.mxu1 %v2941_v3 }
 0x13f   :  { %808 = vmatprep.subr.bf16.mxu1 %v2949_v5 }
 0x142   :  { %809 = vmatpush1.bf16.msra.mxu1 %v2947_v6 }
 0x143   :  { %810 = vmatprep.subr.bf16.mxu1 %v2955_v7 }
 0x145   :  { %324 = vmatmul.mubr.bf16.gmra.mrb[4].mxu1 %v189_v2  ;;  %v3039_v2 = vld [vmem:[#allocation6 + $0x94] ss:$8 sps:$4 sm:$0xff]  }
 0x146   :  { %811 = vmatpush1.bf16.msra.mxu1 %v2953_v8  ;;  %v3037_v8 = vld [vmem:[#allocation6 + $0x90] ss:$8 sps:$4 sm:$0xff]  }
 0x147   :  { %812 = vmatprep.subr.bf16.mxu1 %v2961_v9 }
 0x14a   :  { %813 = vmatpush1.bf16.msra.mxu1 %v2959_v10 }
 0x14b   :  { %814 = vmatprep.subr.bf16.mxu1 %v2967_v11  ;;  %v3042_v11 = vld [vmem:[#allocation6 + $0xa4] ss:$8 sps:$4 sm:$0xff]  }
 0x14e   :  { %815 = vmatpush1.bf16.msra.mxu1 %v2965_v12 }
 0x14f   :  { %816 = vmatprep.subr.bf16.mxu1 %v2973_v13 }
 0x152   :  { %817 = vmatpush1.bf16.msra.mxu1 %v2971_v14 }
 0x153   :  { %818 = vmatprep.subr.bf16.mxu1 %v2979_v15 }
 0x156   :  { %819 = vmatpush1.bf16.msra.mxu1 %v2977_v16  ;;  %v3040_v16 = vld [vmem:[#allocation6 + $0xa0] ss:$8 sps:$4 sm:$0xff]  }
 0x157   :  { %820 = vmatprep.subr.bf16.mxu1 %v2985_v17  ;;  %v3045_v17 = vld [vmem:[#allocation6 + $0xb4] ss:$8 sps:$4 sm:$0xff]  }
 0x15a   :  { %821 = vmatpush1.bf16.msra.mxu1 %v2983_v18  ;;  %v3043_v18 = vld [vmem:[#allocation6 + $0xb0] ss:$8 sps:$4 sm:$0xff]  }
 0x15b   :  { %822 = vmatprep.subr.bf16.mxu1 %v2991_v19  ;;  %v3048_v19 = vld [vmem:[#allocation6 + $0xc4] ss:$8 sps:$4 sm:$0xff]  }
 0x15e   :  { %823 = vmatpush1.bf16.msra.mxu1 %v2989_v20  ;;  %v3046_v20 = vld [vmem:[#allocation6 + $0xc0] ss:$8 sps:$4 sm:$0xff]  }
 0x15f   :  { %824 = vmatprep.subr.bf16.mxu1 %v2997_v21  ;;  %v3051_v21 = vld [vmem:[#allocation6 + $0xd4] ss:$8 sps:$4 sm:$0xff]  }
 0x162   :  { %825 = vmatpush1.bf16.msra.mxu1 %v2995_v22  ;;  %v3049_v22 = vld [vmem:[#allocation6 + $0xd0] ss:$8 sps:$4 sm:$0xff]  }
 0x163   :  { %826 = vmatprep.subr.bf16.mxu1 %v3003_v24  ;;  %v3054_v24 = vld [vmem:[#allocation6 + $0xe4] ss:$8 sps:$4 sm:$0xff]  }
 0x166   :  { %827 = vmatpush1.bf16.msra.mxu1 %v3001_v25  ;;  %v3052_v25 = vld [vmem:[#allocation6 + $0xe0] ss:$8 sps:$4 sm:$0xff]  }
 0x167   :  { %828 = vmatprep.subr.bf16.mxu1 %v3009_v26  ;;  %v3057_v26 = vld [vmem:[#allocation6 + $0xf4] ss:$8 sps:$4 sm:$0xff]  }
 0x16a   :  { %829 = vmatpush1.bf16.msra.mxu1 %v3007_v27  ;;  %v3055_v27 = vld [vmem:[#allocation6 + $0xf0] ss:$8 sps:$4 sm:$0xff]  }
 0x16b   :  { %830 = vmatprep.subr.bf16.mxu1 %v3015_v28  ;;  %v3060_v28 = vld [vmem:[#allocation6 + $0x104] ss:$8 sps:$4 sm:$0xff]  }
 0x16e   :  { %831 = vmatpush1.bf16.msra.mxu1 %v3013_v29  ;;  %v3058_v29 = vld [vmem:[#allocation6 + $0x100] ss:$8 sps:$4 sm:$0xff]  }
 0x16f   :  { %832 = vmatprep.subr.bf16.mxu1 %v3021_v30  ;;  %v3063_v30 = vld [vmem:[#allocation6 + $0x114] ss:$8 sps:$4 sm:$0xff]  }
 0x172   :  { %833 = vmatpush1.bf16.msra.mxu1 %v3019_v31  ;;  %v3061_v31 = vld [vmem:[#allocation6 + $0x110] ss:$8 sps:$4 sm:$0xff]  }
 0x173   :  { %834 = vmatprep.subr.bf16.mxu1 %v3027_v33  ;;  %v3064_v33 = vld [vmem:[#allocation6 + $0x120] ss:$8 sps:$4 sm:$0xff]  }
 0x176   :  { %835 = vmatpush1.bf16.msra.mxu1 %v3025_v35  ;;  %v3067_v35 = vld [vmem:[#allocation6 + $0x130] ss:$8 sps:$4 sm:$0xff]  }
 0x177   :  { %836 = vmatprep.subr.bf16.mxu1 %v3033_v37  ;;  %v3070_v37 = vld [vmem:[#allocation6 + $0x140] ss:$8 sps:$4 sm:$0xff]  }
 0x17a   :  { %837 = vmatpush1.bf16.msra.mxu1 %v3031_v39  ;;  %v3073_v39 = vld [vmem:[#allocation6 + $0x150] ss:$8 sps:$4 sm:$0xff]  }
 0x210   :  { %v315_v48 = vpop.f32.mrb[0].mxu1 }
 0x211   :  { %v316_v49 = vadd.f32 %v315_v48, %v194_v46  ;;  %v317_v50 = vpop.f32.mrb[1].mxu1  ;;  %v3084_v48 = vld [vmem:[#allocation6 + $0x184] ss:$8 sps:$4 sm:$0xff]  }
 0x212   :  { %v318_v51 = vadd.f32 %v317_v50, %v198_v47  ;;  %v319_v52 = vpop.f32.mrb[2].mxu1  ;;  %v3131_v50 = vld [vmem:[#allocation7 + $0x8] sm:$0xff]  }
 0x213   :  { %v320_v53 = vadd.f32 %v319_v52, %v194_v46  ;;  %v321_v54 = vpop.f32.mrb[3].mxu1  ;;  %v334_v56 = vmax.f32 %v316_v49, 0.0  ;;  %v3130_v49 = vld [vmem:[#allocation7 + $0x48] sm:$0xff]   ;;  %v3133_v52 = vld [vmem:[#allocation7 + $0x10] sm:$0xff]  }
 0x214   :  { %v322_v55 = vadd.f32 %v321_v54, %v198_v47  ;;  %v335_v58 = vmax.f32 %v318_v51, 0.0  ;;  %v3132_v51 = vld [vmem:[#allocation7 + $0x50] sm:$0xff]   ;;  %2739 = vmatprep.subr.bf16.mxu1 %v3130_v49  ;;  %v3135_v54 = vld [vmem:[#allocation7 + $0x18] sm:$0xff]  }
 0x215   :  { %v336_v57 = vmax.f32 %v320_v53, 0.0  ;;  %v3134_v53 = vld [vmem:[#allocation7 + $0x58] sm:$0xff]  }
 0x216   :  { %v337_v59 = vmax.f32 %v322_v55, 0.0  ;;  %v3136_v55 = vld [vmem:[#allocation7 + $0x60] sm:$0xff]  }
 0x217   :  { %v408_v60 = vpack.c.bf16 %v336_v57, %v334_v56  ;;  %v3137_v56 = vld [vmem:[#allocation7 + $0x20] sm:$0xff]   ;;  %v3138_v57 = vld [vmem:[#allocation7 + $0x68] sm:$0xff]  }
 0x218   :  { %v409_v61 = vpack.c.bf16 %v337_v59, %v335_v58  ;;  %v325_v62 = vpop.f32.mrb[4].mxu1  ;;  %v3139_v58 = vld [vmem:[#allocation7 + $0x28] sm:$0xff]   ;;  %v3140_v59 = vld [vmem:[#allocation7 + $0x70] sm:$0xff]  }
 0x219   :  { %v326_v0 = vadd.f32 %v325_v62, %v194_v46  ;;  %v327_v1 = vpop.f32.mrb[5].mxu1  ;;  %v427_v62 = vsub.s32 3, %v3492_v42 }
 0x21a   :  { %v328_v3 = vadd.f32 %v327_v1, %v198_v47  ;;  %v329_v4 = vpop.f32.mrb[6].mxu1  ;;  %785 = vmatprep.mubr.bf16.mxu0 %v409_v61  ;;  %838 = vmatprep.mubr.bf16.mxu1 %v409_v61  ;;  %v407_v61 = vld [vmem:[#allocation9 + $0x2] ss:$8 sm:$0xf] }
 0x21b   :  { %v330_v5 = vadd.f32 %v329_v4, %v194_v46  ;;  %v331_v6 = vpop.f32.mrb[7].mxu1  ;;  %786 = vmatmul.mubr.bf16.vlgmr.msra.gmra.mrb[4].mxu0 %v408_v60  ;;  %839 = vmatmul.mubr.bf16.vlgmr.msra.gmra.mrb[8].mxu1 %v408_v60  ;;  %v338_v9 = vmax.f32 %v326_v0, 0.0  ;;  %v3081_v46 = vld [vmem:[#allocation6 + $0x174] ss:$8 sps:$4 sm:$0xff]   ;;  %v423_v60 = vsub.s32 2, %v3492_v42  ;;  %v420_v1 = vrot.slane %v407_v61, %v3498_v45 }
 0x21c   :  { %v332_v7 = vadd.f32 %v331_v6, %v198_v47  ;;  %1281 = vmatpush1.bf16.msra.mxu0 %v3034_v63  ;;  %v339_v12 = vmax.f32 %v328_v3, 0.0  ;;  %v3079_v47 = vld [vmem:[#allocation6 + $0x170] ss:$8 sps:$4 sm:$0xff]   ;;  %2740 = vmatpush3.bf16.msra.mxu1 %v3131_v50  ;;  %v416_v63 = vrot.slane %v407_v61, %v3495_v43 }
 0x21d   :  { %v340_v10 = vmax.f32 %v330_v5, 0.0  ;;  %1282 = vmatprep.subr.bf16.mxu0 %v3039_v2  ;;  %2741 = vmatprep.subr.bf16.mxu1 %v3132_v51  ;;  %v424_v0 = vrot.slane %v407_v61, %v423_v60  ;;  %v428_v2 = vrot.slane %v407_v61, %v427_v62  ;;  %v3227_v42 = vld [vmem:[#allocation7 + $0x190] sm:$0xff]  }
 0x21e   :  { %v341_v13 = vmax.f32 %v332_v7, 0.0 }
 0x21f   :  { %v410_v14 = vpack.c.bf16 %v340_v10, %v338_v9 }
 0x220   :  { %v411_v15 = vpack.c.bf16 %v341_v13, %v339_v12  ;;  %1283 = vmatpush1.bf16.msra.mxu0 %v3037_v8  ;;  %2742 = vmatpush3.bf16.msra.mxu1 %v3133_v52 }
 0x221   :  { %1284 = vmatprep.subr.bf16.mxu0 %v3042_v11  ;;  %2743 = vmatprep.subr.bf16.mxu1 %v3134_v53 }
 0x222   :  { %795 = vmatprep.mubr.bf16.mxu0 %v411_v15  ;;  %848 = vmatprep.mubr.bf16.mxu1 %v411_v15 }
 0x223   :  { %796 = vmatmul.mubr.bf16.gmra.mrb[8].mxu0 %v410_v14  ;;  %849 = vmatmul.mubr.bf16.gmra.mrb[12].mxu1 %v410_v14 }
 0x224   :  { %1285 = vmatpush1.bf16.msra.mxu0 %v3040_v16  ;;  %2744 = vmatpush3.bf16.msra.mxu1 %v3135_v54  ;;  %v3085_v54 = vld [vmem:[#allocation6 + $0x190] ss:$8 sps:$4 sm:$0xff]  }
 0x225   :  { %1286 = vmatprep.subr.bf16.mxu0 %v3045_v17  ;;  %2745 = vmatprep.subr.bf16.mxu1 %v3136_v55 }
 0x228   :  { %1287 = vmatpush1.bf16.msra.mxu0 %v3043_v18  ;;  %2746 = vmatpush3.bf16.msra.mxu1 %v3137_v56 }
 0x229   :  { %1288 = vmatprep.subr.bf16.mxu0 %v3048_v19  ;;  %2747 = vmatprep.subr.bf16.mxu1 %v3138_v57 }
 0x22c   :  { %1289 = vmatpush1.bf16.msra.mxu0 %v3046_v20  ;;  %2748 = vmatpush3.bf16.msra.mxu1 %v3139_v58 }
 0x22d   :  { %1290 = vmatprep.subr.bf16.mxu0 %v3051_v21  ;;  %2749 = vmatprep.subr.bf16.mxu1 %v3140_v59  ;;  %v3090_v59 = vld [vmem:[#allocation6 + $0x1a4] ss:$8 sps:$4 sm:$0xff]  }
 0x230   :  { %1291 = vmatpush1.bf16.msra.mxu0 %v3049_v22 }
 0x231   :  { %1292 = vmatprep.subr.bf16.mxu0 %v3054_v24 }
 0x234   :  { %1293 = vmatpush1.bf16.msra.mxu0 %v3052_v25 }
 0x235   :  { %1294 = vmatprep.subr.bf16.mxu0 %v3057_v26 }
 0x238   :  { %1295 = vmatpush1.bf16.msra.mxu0 %v3055_v27 }
 0x239   :  { %1296 = vmatprep.subr.bf16.mxu0 %v3060_v28 }
 0x23c   :  { %1297 = vmatpush1.bf16.msra.mxu0 %v3058_v29 }
 0x23d   :  { %1298 = vmatprep.subr.bf16.mxu0 %v3063_v30 }
 0x240   :  { %1299 = vmatpush1.bf16.msra.mxu0 %v3061_v31 }
 0x241   :  { %1300 = vmatprep.subr.bf16.mxu0 %v3066_v32 }
 0x244   :  { %1301 = vmatpush1.bf16.msra.mxu0 %v3064_v33 }
 0x245   :  { %1302 = vmatprep.subr.bf16.mxu0 %v3069_v34  ;;  %v3082_v34 = vld [vmem:[#allocation6 + $0x180] ss:$8 sps:$4 sm:$0xff]  }
 0x248   :  { %1303 = vmatpush1.bf16.msra.mxu0 %v3067_v35 }
 0x249   :  { %1304 = vmatprep.subr.bf16.mxu0 %v3072_v36 }
 0x24c   :  { %1305 = vmatpush1.bf16.msra.mxu0 %v3070_v37 }
 0x24d   :  { %1306 = vmatprep.subr.bf16.mxu0 %v3075_v38 }
 0x250   :  { %1307 = vmatpush1.bf16.msra.mxu0 %v3073_v39  ;;  %v3087_v39 = vld [vmem:[#allocation6 + $0x194] ss:$8 sps:$4 sm:$0xff]  }
 0x251   :  { %1308 = vmatprep.subr.bf16.mxu0 %v3078_v40 }
 0x254   :  { %1309 = vmatpush1.bf16.msra.mxu0 %v3076_v44 }
 0x255   :  { %1310 = vmatprep.subr.bf16.mxu0 %v3081_v46 }
 0x258   :  { %1311 = vmatpush1.bf16.msra.mxu0 %v3079_v47 }
 0x259   :  { %1333 = vmatprep.subr.bf16.mxu0 %v3084_v48 }
 0x2ee   :  { %v787_v3 = vpop.f32.mrb[4].mxu0  ;;  %v840_v4 = vpop.f32.mrb[8].mxu1 }
 0x2ef   :  { %v788_v5 = vadd.f32 %v787_v3, %v416_v63  ;;  %v841_v6 = vadd.f32 %v840_v4, %v424_v0  ;;  %v789_v7 = vpop.f32.mrb[5].mxu0  ;;  %v842_v8 = vpop.f32.mrb[9].mxu1 }
 0x2f0   :  { %v790_v9 = vadd.f32 %v789_v7, %v420_v1  ;;  %v843_v10 = vadd.f32 %v842_v8, %v428_v2  ;;  %v791_v11 = vpop.f32.mrb[6].mxu0  ;;  %v844_v12 = vpop.f32.mrb[10].mxu1  ;;  %v3091_v8 = vld [vmem:[#allocation6 + $0x1b0] ss:$8 sps:$4 sm:$0xff]  }
 0x2f1   :  { %v792_v13 = vadd.f32 %v791_v11, %v416_v63  ;;  %v845_v14 = vadd.f32 %v844_v12, %v424_v0  ;;  %v793_v15 = vpop.f32.mrb[7].mxu0  ;;  %v846_v16 = vpop.f32.mrb[11].mxu1  ;;  %v859_v19 = vmax.f32 %v788_v5, 0.0  ;;  %v861_v20 = vmax.f32 %v841_v6, 0.0  ;;  %v3099_v11 = vld [vmem:[#allocation6 + $0x1d4] ss:$8 sps:$4 sm:$0xff]  }
 0x2f2   :  { %v794_v17 = vadd.f32 %v793_v15, %v420_v1  ;;  %v847_v18 = vadd.f32 %v846_v16, %v428_v2  ;;  %v860_v24 = vmax.f32 %v790_v9, 0.0  ;;  %v862_v25 = vmax.f32 %v843_v10, 0.0  ;;  %v3096_v9 = vld [vmem:[#allocation6 + $0x1c4] ss:$8 sps:$4 sm:$0xff]   ;;  %v3094_v10 = vld [vmem:[#allocation6 + $0x1c0] ss:$8 sps:$4 sm:$0xff]  }
 0x2f3   :  { %v863_v21 = vmax.f32 %v792_v13, 0.0  ;;  %v865_v22 = vmax.f32 %v845_v14, 0.0  ;;  %v3097_v12 = vld [vmem:[#allocation6 + $0x1d0] ss:$8 sps:$4 sm:$0xff]   ;;  %v3102_v13 = vld [vmem:[#allocation6 + $0x1e4] ss:$8 sps:$4 sm:$0xff]  }
 0x2f4   :  { %v864_v26 = vmax.f32 %v794_v17, 0.0  ;;  %v866_v27 = vmax.f32 %v847_v18, 0.0  ;;  %v3100_v14 = vld [vmem:[#allocation6 + $0x1e0] ss:$8 sps:$4 sm:$0xff]   ;;  %v3105_v15 = vld [vmem:[#allocation6 + $0x1f4] ss:$8 sps:$4 sm:$0xff]  }
 0x2f5   :  { %v941_v28 = vpack.c.bf16 %v863_v21, %v859_v19  ;;  %v3510_v29 = vpack.c.bf16 %v865_v22, %v861_v20  ;;  %v3103_v16 = vld [vmem:[#allocation6 + $0x1f0] ss:$8 sps:$4 sm:$0xff]   ;;  %v3108_v17 = vld [vmem:[#allocation6 + $0x204] ss:$8 sps:$4 sm:$0xff]   ;;  %v3106_v18 = vld [vmem:[#allocation6 + $0x200] ss:$8 sps:$4 sm:$0xff]  }
 0x2f6   :  { %v942_v30 = vpack.c.bf16 %v864_v26, %v860_v24  ;;  %v944_v31 = vpack.c.bf16 %v866_v27, %v862_v25  ;;  %v797_v32 = vpop.f32.mrb[8].mxu0  ;;  %v850_v33 = vpop.f32.mrb[12].mxu1  ;;  %v3111_v19 = vld [vmem:[#allocation6 + $0x214] ss:$8 sps:$4 sm:$0xff]   ;;  %v3109_v20 = vld [vmem:[#allocation6 + $0x210] ss:$8 sps:$4 sm:$0xff]  }
 0x2f7   :  { %v798_v35 = vadd.f32 %v797_v32, %v416_v63  ;;  %v851_v36 = vadd.f32 %v850_v33, %v424_v0  ;;  %v799_v37 = vpop.f32.mrb[9].mxu0  ;;  %v852_v38 = vpop.f32.mrb[13].mxu1  ;;  %v3114_v21 = vld [vmem:[#allocation6 + $0x224] ss:$8 sps:$4 sm:$0xff]   ;;  %v3112_v22 = vld [vmem:[#allocation6 + $0x220] ss:$8 sps:$4 sm:$0xff]  }
 0x2f8   :  { %v800_v40 = vadd.f32 %v799_v37, %v420_v1  ;;  %v853_v44 = vadd.f32 %v852_v38, %v428_v2  ;;  %v801_v46 = vpop.f32.mrb[10].mxu0  ;;  %v854_v47 = vpop.f32.mrb[14].mxu1  ;;  %1312 = vmatprep.mubr.bf16.mxu0 %v942_v30  ;;  %v3117_v24 = vld [vmem:[#allocation6 + $0x234] ss:$8 sps:$4 sm:$0xff]   ;;  %v3115_v25 = vld [vmem:[#allocation6 + $0x230] ss:$8 sps:$4 sm:$0xff]  }
 0x2f9   :  { %v802_v48 = vadd.f32 %v801_v46, %v416_v63  ;;  %v855_v49 = vadd.f32 %v854_v47, %v424_v0  ;;  %v803_v50 = vpop.f32.mrb[11].mxu0  ;;  %v856_v51 = vpop.f32.mrb[15].mxu1  ;;  %1313 = vmatmul.mubr.bf16.vlgmr.msra.gmra.mrb[12].mxu0 %v941_v28  ;;  %v867_v55 = vmax.f32 %v798_v35, 0.0  ;;  %v869_v56 = vmax.f32 %v851_v36, 0.0  ;;  %v3120_v26 = vld [vmem:[#allocation6 + $0x244] ss:$8 sps:$4 sm:$0xff]  }
 0x2fa   :  { %v804_v52 = vadd.f32 %v803_v50, %v420_v1  ;;  %v857_v53 = vadd.f32 %v856_v51, %v428_v2  ;;  %1334 = vmatpush1.bf16.msra.mxu0 %v3082_v34  ;;  %v868_v61 = vmax.f32 %v800_v40, 0.0  ;;  %v870_v3 = vmax.f32 %v853_v44, 0.0  ;;  %v3088_v1 = vld [vmem:[#allocation6 + $0x1a0] ss:$8 sps:$4 sm:$0xff]   ;;  %v3093_v2 = vld [vmem:[#allocation6 + $0x1b4] ss:$8 sps:$4 sm:$0xff]  }
 0x2fb   :  { %v871_v57 = vmax.f32 %v802_v48, 0.0  ;;  %v873_v58 = vmax.f32 %v855_v49, 0.0  ;;  %1335 = vmatprep.subr.bf16.mxu0 %v3087_v39  ;;  %v3118_v27 = vld [vmem:[#allocation6 + $0x240] ss:$8 sps:$4 sm:$0xff]   ;;  %v3123_v28 = vld [vmem:[#allocation6 + $0x254] ss:$8 sps:$4 sm:$0xff]  }
 0x2fc   :  { %v872_v4 = vmax.f32 %v804_v52, 0.0  ;;  %v874_v5 = vmax.f32 %v857_v53, 0.0  ;;  %v3121_v30 = vld [vmem:[#allocation6 + $0x250] ss:$8 sps:$4 sm:$0xff]   ;;  %v3124_v32 = vld [vmem:[#allocation6 + $0x260] ss:$8 sps:$4 sm:$0xff]  }
 0x2fd   :  { %v945_v6 = vpack.c.bf16 %v871_v57, %v867_v55  ;;  %v3512_v63 = vpack.c.bf16 %v873_v58, %v869_v56  ;;  %v3129_v33 = vld [vmem:[#allocation6 + $0x274] ss:$8 sps:$4 sm:$0xff]   ;;  %v3127_v34 = vld [vmem:[#allocation6 + $0x270] ss:$8 sps:$4 sm:$0xff]   ;;  %v3144_v38 = vld [vmem:[#allocation7 + $0x80] sm:$0xff]  }
 0x2fe   :  { %v946_v0 = vpack.c.bf16 %v872_v4, %v868_v61  ;;  %v948_v7 = vpack.c.bf16 %v874_v5, %v870_v3  ;;  %1336 = vmatpush1.bf16.msra.mxu0 %v3085_v54  ;;  %v3141_v35 = vld [vmem:[#allocation7 + $0x30] sm:$0xff]   ;;  %v3142_v36 = vld [vmem:[#allocation7 + $0x78] sm:$0xff]   ;;  %v3145_v39 = vld [vmem:[#allocation7 + $0x40] sm:$0xff]  }
 0x2ff   :  { %1337 = vmatprep.subr.bf16.mxu0 %v3090_v59  ;;  %2750 = vmatpush3.bf16.msra.mxu1 %v3141_v35  ;;  %v3143_v37 = vld [vmem:[#allocation7 + $0x38] sm:$0xff]   ;;  %v1585_v40 = vld [vmem:[%s3559_s2] sm:$0xff] }
 0x300   :  { %1322 = vmatprep.mubr.bf16.mxu0 %v946_v0  ;;  %2751 = vmatprep.subr.bf16.mxu1 %v3142_v36  ;;  %v3148_v46 = vld [vmem:[#allocation4 + $0x204] ss:$16 sps:$4 sm:$0xff]   ;;  %v940_v47 = vld [vmem:[#allocation9 + $0x3] ss:$8 sm:$0x3] }
 0x301   :  { %1323 = vmatmul.mubr.bf16.gmra.mrb[16].mxu0 %v945_v6  ;;  %v953_v48 = vrot.slane %v940_v47, %v3495_v43  ;;  %v957_v49 = vrot.slane %v940_v47, %v3498_v45 }
 0x302   :  { %1338 = vmatpush1.bf16.msra.mxu0 %v3088_v1  ;;  %1365 = vmatprep.mubr.bf16.mxu0 %v944_v31  ;;  %v3126_v31 = vld [vmem:[#allocation6 + $0x264] ss:$8 sps:$4 sm:$0xff]  }
 0x303   :  { %1339 = vmatprep.subr.bf16.mxu0 %v3093_v2  ;;  %2752 = vmatpush3.bf16.msra.mxu1 %v3143_v37  ;;  %v3151_v1 = vld [vmem:[#allocation4 + $0x224] ss:$16 sps:$4 sm:$0xff]  }
 0x304   :  { %2753 = vmatprep.subr.bf16.mxu1 %v3144_v38 }
 0x306   :  { %1340 = vmatpush1.bf16.msra.mxu0 %v3091_v8 }
 0x307   :  { %1341 = vmatprep.subr.bf16.mxu0 %v3096_v9  ;;  %2754 = vmatpush3.bf16.msra.mxu1 %v3145_v39 }
 0x308   :  { %1815 = vmatprep.subr.bf16.mxu1 %v3148_v46 }
 0x30a   :  { %1342 = vmatpush1.bf16.msra.mxu0 %v3094_v10 }
 0x30b   :  { %1343 = vmatprep.subr.bf16.mxu0 %v3099_v11 }
 0x30e   :  { %1344 = vmatpush1.bf16.msra.mxu0 %v3097_v12  ;;  %v3149_v12 = vld [vmem:[#allocation4 + $0x220] ss:$16 sps:$4 sm:$0xff]  }
 0x30f   :  { %1345 = vmatprep.subr.bf16.mxu0 %v3102_v13 }
 0x312   :  { %1346 = vmatpush1.bf16.msra.mxu0 %v3100_v14 }
 0x313   :  { %1347 = vmatprep.subr.bf16.mxu0 %v3105_v15  ;;  %v3154_v15 = vld [vmem:[#allocation4 + $0x244] ss:$16 sps:$4 sm:$0xff]  }
 0x316   :  { %1348 = vmatpush1.bf16.msra.mxu0 %v3103_v16 }
 0x317   :  { %1349 = vmatprep.subr.bf16.mxu0 %v3108_v17 }
 0x31a   :  { %1350 = vmatpush1.bf16.msra.mxu0 %v3106_v18 }
 0x31b   :  { %1351 = vmatprep.subr.bf16.mxu0 %v3111_v19 }
 0x31e   :  { %1352 = vmatpush1.bf16.msra.mxu0 %v3109_v20  ;;  %v3152_v20 = vld [vmem:[#allocation4 + $0x240] ss:$16 sps:$4 sm:$0xff]  }
 0x31f   :  { %1353 = vmatprep.subr.bf16.mxu0 %v3114_v21  ;;  %v3157_v21 = vld [vmem:[#allocation4 + $0x264] ss:$16 sps:$4 sm:$0xff]  }
 0x322   :  { %1354 = vmatpush1.bf16.msra.mxu0 %v3112_v22  ;;  %v3155_v22 = vld [vmem:[#allocation4 + $0x260] ss:$16 sps:$4 sm:$0xff]  }
 0x323   :  { %1355 = vmatprep.subr.bf16.mxu0 %v3117_v24  ;;  %v3160_v24 = vld [vmem:[#allocation4 + $0x284] ss:$16 sps:$4 sm:$0xff]  }
 0x326   :  { %1356 = vmatpush1.bf16.msra.mxu0 %v3115_v25  ;;  %v3158_v25 = vld [vmem:[#allocation4 + $0x280] ss:$16 sps:$4 sm:$0xff]  }
 0x327   :  { %1357 = vmatprep.subr.bf16.mxu0 %v3120_v26  ;;  %v3163_v26 = vld [vmem:[#allocation4 + $0x2a4] ss:$16 sps:$4 sm:$0xff]  }
 0x32a   :  { %1358 = vmatpush1.bf16.msra.mxu0 %v3118_v27  ;;  %v3161_v27 = vld [vmem:[#allocation4 + $0x2a0] ss:$16 sps:$4 sm:$0xff]  }
 0x32b   :  { %1359 = vmatprep.subr.bf16.mxu0 %v3123_v28  ;;  %v3166_v28 = vld [vmem:[#allocation4 + $0x2c4] ss:$16 sps:$4 sm:$0xff]  }
 0x32e   :  { %1360 = vmatpush1.bf16.msra.mxu0 %v3121_v30  ;;  %v3164_v30 = vld [vmem:[#allocation4 + $0x2c0] ss:$16 sps:$4 sm:$0xff]  }
 0x32f   :  { %1361 = vmatprep.subr.bf16.mxu0 %v3126_v31  ;;  %v3169_v31 = vld [vmem:[#allocation4 + $0x2e4] ss:$16 sps:$4 sm:$0xff]  }
 0x332   :  { %1362 = vmatpush1.bf16.msra.mxu0 %v3124_v32  ;;  %v3167_v32 = vld [vmem:[#allocation4 + $0x2e0] ss:$16 sps:$4 sm:$0xff]  }
 0x333   :  { %1363 = vmatprep.subr.bf16.mxu0 %v3129_v33  ;;  %v3172_v33 = vld [vmem:[#allocation4 + $0x20c] ss:$16 sps:$4 sm:$0xff]  }
 0x336   :  { %1364 = vmatpush1.bf16.msra.mxu0 %v3127_v34 }
 0x339   :  { %1366 = vmatmul.mubr.bf16.vlgmr.msra.gmra.mrb[12].mxu0 %v3510_v29  ;;  %v1586_v29 = vld [vmem:[%s3559_s2 + $0x8] sm:$0xff] }
 0x33a   :  { %1375 = vmatprep.mubr.bf16.mxu0 %v948_v7  ;;  %v2908_v44 = vpack.i.bf16 %v1586_v29, %v1585_v40  ;;  %v1426_v40 = vld [vmem:[#allocation9 + $0x4] ss:$0 sm:$0xff] }
 0x33c   :  { %2909 = vperm.xlu0 %2907, %v2908_v44  }
 0x341   :  { %1376 = vmatmul.mubr.bf16.gmra.mrb[16].mxu0 %v3512_v63  ;;  %v3146_v63 = vld [vmem:[#allocation4 + $0x200] ss:$16 sps:$4 sm:$0xff]  }
 0x40c   :  { %v1367_v50 = vpop.f32.mrb[12].mxu0 }
 0x40d   :  { %v2875_v51 = vadd.f32 %v1367_v50, %v953_v48  ;;  %v1369_v52 = vpop.f32.mrb[13].mxu0 }
 0x40e   :  { %v2876_v53 = vadd.f32 %v1369_v52, %v957_v49  ;;  %v1371_v54 = vpop.f32.mrb[14].mxu0 }
 0x40f   :  { %v2877_v55 = vadd.f32 %v1371_v54, %v953_v48  ;;  %v1373_v56 = vpop.f32.mrb[15].mxu0  ;;  %v1386_v58 = vmax.f32 %v2875_v51, 0.0  ;;  %v1583_v54 = vand.u32 127, %v191_v41  ;;  %v3178_v41 = vld [vmem:[#allocation4 + $0x24c] ss:$16 sps:$4 sm:$0xff]  }
 0x410   :  { %v2878_v57 = vadd.f32 %v1373_v56, %v957_v49  ;;  %v1387_v61 = vmax.f32 %v2876_v53, 0.0  ;;  %v2910_v53 = vpop.permute.xlu0 %2909 }
 0x411   :  { %v1388_v59 = vmax.f32 %v2877_v55, 0.0  ;;  %vm1584_vm1 = vcmp.eq.s32.totalorder %v1583_v54, 127  ;;  %v3225_v54 = vld [vmem:[#allocation7 + $0x140] sm:$0xff]  }
 0x412   :  { %v1389_v3 = vmax.f32 %v2878_v57, 0.0 }
 0x413   :  { %v1427_v4 = vpack.c.bf16 %v1388_v59, %v1386_v58  ;;  %v2911_v58 = vunpack.i.l.bf16 %v2910_v53 }
 0x414   :  { %v1428_v5 = vpack.c.bf16 %v1389_v3, %v1387_v61  ;;  %v1377_v6 = vpop.f32.mrb[16].mxu0 }
 0x415   :  { %v2879_v0 = vadd.f32 %v1377_v6, %v953_v48  ;;  %v1379_v7 = vpop.f32.mrb[17].mxu0 }
 0x416   :  { %v2880_v2 = vadd.f32 %v1379_v7, %v957_v49  ;;  %v1381_v8 = vpop.f32.mrb[18].mxu0  ;;  %1559 = vmatprep.mubr.bf16.mxu1 %v1428_v5 }
 0x417   :  { %v2881_v9 = vadd.f32 %v1381_v8, %v953_v48  ;;  %v1383_v10 = vpop.f32.mrb[19].mxu0  ;;  %1560 = vmatmul.mubr.bf16.vlgmr.msra.gmra.mrb[16].mxu1 %v1427_v4  ;;  %v1390_v13 = vmax.f32 %v2879_v0, 0.0  ;;  %v2912_v4 = vunpack.i.h.bf16 %v2910_v53  ;;  %v3170_v0 = vld [vmem:[#allocation4 + $0x208] ss:$16 sps:$4 sm:$0xff]   ;;  %v3224_v53 = vld [vmem:[#allocation7 + $0x180] sm:$0xff]  }
 0x418   :  { %v2882_v11 = vadd.f32 %v1383_v10, %v957_v49  ;;  %1816 = vmatpush1.bf16.msra.mxu1 %v3146_v63  ;;  %v1391_v16 = vmax.f32 %v2880_v2, 0.0  ;;  %v3173_v2 = vld [vmem:[#allocation4 + $0x228] ss:$16 sps:$4 sm:$0xff]  }
 0x419   :  { %v1392_v14 = vmax.f32 %v2881_v9, 0.0  ;;  %1817 = vmatprep.subr.bf16.mxu1 %v3151_v1  ;;  %v3175_v1 = vld [vmem:[#allocation4 + $0x22c] ss:$16 sps:$4 sm:$0xff]   ;;  %v3176_v8 = vld [vmem:[#allocation4 + $0x248] ss:$16 sps:$4 sm:$0xff]  }
 0x41a   :  { %v1393_v17 = vmax.f32 %v2882_v11, 0.0  ;;  %v3181_v9 = vld [vmem:[#allocation4 + $0x26c] ss:$16 sps:$4 sm:$0xff]   ;;  %v3179_v10 = vld [vmem:[#allocation4 + $0x268] ss:$16 sps:$4 sm:$0xff]  }
 0x41b   :  { %v1429_v18 = vpack.c.bf16 %v1392_v14, %v1390_v13  ;;  %v3184_v11 = vld [vmem:[#allocation4 + $0x28c] ss:$16 sps:$4 sm:$0xff]   ;;  %v3185_v14 = vld [vmem:[#allocation4 + $0x2a8] ss:$16 sps:$4 sm:$0xff]  }
 0x41c   :  { %v1430_v19 = vpack.c.bf16 %v1393_v17, %v1391_v16  ;;  %1818 = vmatpush1.bf16.msra.mxu1 %v3149_v12  ;;  %v3182_v12 = vld [vmem:[#allocation4 + $0x288] ss:$16 sps:$4 sm:$0xff]   ;;  %v3187_v13 = vld [vmem:[#allocation4 + $0x2ac] ss:$16 sps:$4 sm:$0xff]  }
 0x41d   :  { %1819 = vmatprep.subr.bf16.mxu1 %v3154_v15  ;;  %v3190_v15 = vld [vmem:[#allocation4 + $0x2cc] ss:$16 sps:$4 sm:$0xff]   ;;  %v3191_v17 = vld [vmem:[#allocation4 + $0x2e8] ss:$16 sps:$4 sm:$0xff]  }
 0x41e   :  { %1567 = vmatprep.mubr.bf16.mxu1 %v1430_v19  ;;  %v3193_v16 = vld [vmem:[#allocation4 + $0x2ec] ss:$16 sps:$4 sm:$0xff]  }
 0x41f   :  { %1568 = vmatmul.mubr.bf16.gmra.mrb[20].mxu1 %v1429_v18  ;;  %v3194_v18 = vld [vmem:[#allocation7 + $0xc8] sm:$0xff]  }
 0x420   :  { %1820 = vmatpush1.bf16.msra.mxu1 %v3152_v20  ;;  %1847 = vmatprep.mubr.bf16.mxu1 %v3379_v23  ;;  %v3195_v19 = vld [vmem:[#allocation7 + $0x88] sm:$0xff]   ;;  %v3196_v20 = vld [vmem:[#allocation7 + $0xd0] sm:$0xff]  }
 0x421   :  { %1821 = vmatprep.subr.bf16.mxu1 %v3157_v21  ;;  %v3197_v21 = vld [vmem:[#allocation7 + $0x90] sm:$0xff]  }
 0x424   :  { %1822 = vmatpush1.bf16.msra.mxu1 %v3155_v22  ;;  %v3198_v22 = vld [vmem:[#allocation7 + $0xd8] sm:$0xff]  }
 0x425   :  { %1823 = vmatprep.subr.bf16.mxu1 %v3160_v24  ;;  %v3199_v24 = vld [vmem:[#allocation7 + $0x98] sm:$0xff]  }
 0x428   :  { %1824 = vmatpush1.bf16.msra.mxu1 %v3158_v25  ;;  %v3200_v25 = vld [vmem:[#allocation7 + $0xe0] sm:$0xff]  }
 0x429   :  { %1825 = vmatprep.subr.bf16.mxu1 %v3163_v26  ;;  %v3201_v26 = vld [vmem:[#allocation7 + $0xa0] sm:$0xff]  }
 0x42c   :  { %1826 = vmatpush1.bf16.msra.mxu1 %v3161_v27  ;;  %v3202_v27 = vld [vmem:[#allocation7 + $0xe8] sm:$0xff]  }
 0x42d   :  { %1827 = vmatprep.subr.bf16.mxu1 %v3166_v28  ;;  %v3203_v28 = vld [vmem:[#allocation7 + $0xa8] sm:$0xff]  }
 0x430   :  { %1828 = vmatpush1.bf16.msra.mxu1 %v3164_v30  ;;  %v3204_v30 = vld [vmem:[#allocation7 + $0xf0] sm:$0xff]  }
 0x431   :  { %1829 = vmatprep.subr.bf16.mxu1 %v3169_v31  ;;  %v3205_v31 = vld [vmem:[#allocation7 + $0xb0] sm:$0xff]  }
 0x434   :  { %1830 = vmatpush1.bf16.msra.mxu1 %v3167_v32  ;;  %v3206_v32 = vld [vmem:[#allocation7 + $0xf8] sm:$0xff]  }
 0x435   :  { %1858 = vmatprep.subr.bf16.mxu1 %v3172_v33  ;;  %v3207_v33 = vld [vmem:[#allocation7 + $0xb8] sm:$0xff]  }
 0x4ea   :  { %v2755_v34 = vpop.f32.mrb[16].mxu1 }
 0x4eb   :  { %v2756_v35 = vpop.f32.mrb[17].mxu1 }
 0x4ec   :  { %v2757_v36 = vadd.f32 %v2756_v35, %v2755_v34  ;;  %v2758_v37 = vpop.f32.mrb[18].mxu1  ;;  %v3208_v34 = vld [vmem:[#allocation7 + $0x100] sm:$0xff]  }
 0x4ed   :  { %v2759_v38 = vpop.f32.mrb[19].mxu1  ;;  %v3209_v35 = vld [vmem:[#allocation7 + $0xc0] sm:$0xff]  }
 0x4ee   :  { %v2760_v39 = vadd.f32 %v2759_v38, %v2758_v37  ;;  %v1562_v46 = vadd.f32 %v2757_v36, %v1426_v40  ;;  %v3210_v36 = vld [vmem:[#allocation7 + $0x148] sm:$0xff]   ;;  %v3212_v38 = vld [vmem:[#allocation7 + $0x150] sm:$0xff]  }
 0x4ef   :  { %v3211_v37 = vld [vmem:[#allocation7 + $0x108] sm:$0xff]   ;;  %2789 = vmatprep.subr.bf16.mxu0 %v3210_v36 }
 0x4f0   :  { %v1565_v50 = vadd.f32 %v2760_v39, %v1426_v40  ;;  %v1576_v55 = vmax.f32 %v1562_v46, 0.0  ;;  %2790 = vmatpush3.bf16.msra.mxu0 %v3211_v37  ;;  %v3213_v39 = vld [vmem:[#allocation7 + $0x110] sm:$0xff]   ;;  %v3217_v46 = vld [vmem:[#allocation7 + $0x120] sm:$0xff]  }
 0x4f1   :  { %2791 = vmatprep.subr.bf16.mxu0 %v3212_v38 }
 0x4f2   :  { %v2761_v29 = vpop.f32.mrb[20].mxu1  ;;  %v1577_v59 = vmax.f32 %v1565_v50, 0.0  ;;  %v3221_v50 = vld [vmem:[#allocation7 + $0x130] sm:$0xff]  }
 0x4f3   :  { %v2762_v44 = vpop.f32.mrb[21].mxu1 }
 0x4f4   :  { %v2763_v47 = vadd.f32 %v2762_v44, %v2761_v29  ;;  %v2764_v48 = vpop.f32.mrb[22].mxu1  ;;  %2792 = vmatpush3.bf16.msra.mxu0 %v3213_v39  ;;  %v3215_v29 = vld [vmem:[#allocation7 + $0x118] sm:$0xff]   ;;  %v3216_v44 = vld [vmem:[#allocation7 + $0x160] sm:$0xff]  }
 0x4f5   :  { %v2765_v49 = vpop.f32.mrb[23].mxu1 }
 0x4f6   :  { %v1570_v51 = vadd.f32 %v2763_v47, %v1426_v40  ;;  %v2766_v52 = vadd.f32 %v2765_v49, %v2764_v48  ;;  %v3218_v47 = vld [vmem:[#allocation7 + $0x168] sm:$0xff]   ;;  %v3220_v49 = vld [vmem:[#allocation7 + $0x170] sm:$0xff]  }
 0x4f7   :  { %v3219_v48 = vld [vmem:[#allocation7 + $0x128] sm:$0xff]  }
 0x4f8   :  { %v1578_v56 = vmax.f32 %v1570_v51, 0.0  ;;  %v1573_v57 = vadd.f32 %v2766_v52, %v1426_v40  ;;  %v3214_v40 = vld [vmem:[#allocation7 + $0x158] sm:$0xff]  }
 0x4f9   :  { %2793 = vmatprep.subr.bf16.mxu0 %v3214_v40  ;;  %v3222_v51 = vld [vmem:[#allocation7 + $0x178] sm:$0xff]  }
 0x4fa   :  { %v1580_v61 = vsub.f32 %v1576_v55, %v1578_v56  ;;  %v1579_v3 = vmax.f32 %v1573_v57, 0.0  ;;  %2794 = vmatpush3.bf16.msra.mxu0 %v3215_v29  ;;  %v3223_v52 = vld [vmem:[#allocation7 + $0x138] sm:$0xff]  }
 0x4fb   :  { %2795 = vmatprep.subr.bf16.mxu0 %v3216_v44  ;;  %v1632_v55 = vld [vmem:[#allocation9 + $0x5] ss:$8 sm:$0xf]  ;;  %v1973_v44 = vld [vmem:[#allocation9 + $0x6] ss:$0 sm:$0xff] }
 0x4fc   :  { %v1581_v5 = vsub.f32 %v1577_v59, %v1579_v3  ;;  %v1597_v6 = vsel %vm1584_vm1, %v2911_v58, %v1580_v61  ;;  %v1638_v56 = vrot.slane %v1632_v55, %v3495_v43  ;;  %v1642_v57 = vrot.slane %v1632_v55, %v3498_v45 }
 0x4fd   :  { %v1646_v43 = vrot.slane %v1632_v55, %v423_v60  ;;  %v1650_v45 = vrot.slane %v1632_v55, %v427_v62  ;;  %v3226_v60 = vld [vmem:[#allocation7 + $0x188] sm:$0xff]   ;;  %v3228_v62 = vld [vmem:[#allocation7 + $0x198] sm:$0xff]  }
 0x4fe   :  { %v1598_v63 = vsel %vm1584_vm1, %v2912_v4, %v1581_v5  ;;  %2796 = vmatpush3.bf16.msra.mxu0 %v3217_v46 }
 0x4ff   :  { %v1633_v7 = vpack.c.bf16 %v1598_v63, %v1597_v6  ;;  %2797 = vmatprep.subr.bf16.mxu0 %v3218_v47 }
 0x501   :  { %1848 = vmatmul.mubr.bf16.vlgmr.msra.gmra.mrb[24].mxu1 %v1633_v7 }
 0x502   :  { %1859 = vmatpush1.bf16.msra.mxu1 %v3170_v0  ;;  %1890 = vmatprep.mubr.bf16.mxu1 %v3379_v23  ;;  %v3188_v23 = vld [vmem:[#allocation4 + $0x2c8] ss:$16 sps:$4 sm:$0xff]  }
 0x503   :  { %1860 = vmatprep.subr.bf16.mxu1 %v3175_v1  ;;  %2798 = vmatpush3.bf16.msra.mxu0 %v3219_v48 }
 0x504   :  { %2799 = vmatprep.subr.bf16.mxu0 %v3220_v49 }
 0x506   :  { %1861 = vmatpush1.bf16.msra.mxu1 %v3173_v2 }
 0x507   :  { %1862 = vmatprep.subr.bf16.mxu1 %v3178_v41  ;;  %2800 = vmatpush3.bf16.msra.mxu0 %v3221_v50 }
 0x508   :  { %2801 = vmatprep.subr.bf16.mxu0 %v3222_v51 }
 0x50a   :  { %1863 = vmatpush1.bf16.msra.mxu1 %v3176_v8 }
 0x50b   :  { %1864 = vmatprep.subr.bf16.mxu1 %v3181_v9  ;;  %2802 = vmatpush3.bf16.msra.mxu0 %v3223_v52 }
 0x50c   :  { %2803 = vmatprep.subr.bf16.mxu0 %v3224_v53 }
 0x50e   :  { %1865 = vmatpush1.bf16.msra.mxu1 %v3179_v10 }
 0x50f   :  { %1866 = vmatprep.subr.bf16.mxu1 %v3184_v11  ;;  %2804 = vmatpush3.bf16.msra.mxu0 %v3225_v54 }
 0x512   :  { %1867 = vmatpush1.bf16.msra.mxu1 %v3182_v12 }
 0x513   :  { %1868 = vmatprep.subr.bf16.mxu1 %v3187_v13 }
 0x516   :  { %1869 = vmatpush1.bf16.msra.mxu1 %v3185_v14 }
 0x517   :  { %1870 = vmatprep.subr.bf16.mxu1 %v3190_v15 }
 0x51a   :  { %1871 = vmatpush1.bf16.msra.mxu1 %v3188_v23 }
 0x51b   :  { %1872 = vmatprep.subr.bf16.mxu1 %v3193_v16 }
 0x51e   :  { %1873 = vmatpush1.bf16.msra.mxu1 %v3191_v17 }
 0x51f   :  { %2767 = vmatprep.subr.bf16.mxu1 %v3194_v18 }
 0x521   :  { %1891 = vmatmul.mubr.bf16.vlgmr.msra.gmra.mrb[28].mxu1 %v1633_v7 }
 0x522   :  { %2768 = vmatpush3.bf16.msra.mxu1 %v3195_v19 }
 0x523   :  { %2769 = vmatprep.subr.bf16.mxu1 %v3196_v20 }
 0x526   :  { %2770 = vmatpush3.bf16.msra.mxu1 %v3197_v21 }
 0x527   :  { %2771 = vmatprep.subr.bf16.mxu1 %v3198_v22  ;;  %v3380_v22 = vmov 0.0  }
 0x528   :  { %2855 = vmatprep.subr.bf16.mxu0 %v3380_v22 }
 0x52a   :  { %2772 = vmatpush3.bf16.msra.mxu1 %v3199_v24  ;;  %v3229_v24 = vld [vmem:[#allocation7 + $0x1a0] sm:$0xff]  }
 0x52b   :  { %2773 = vmatprep.subr.bf16.mxu1 %v3200_v25  ;;  %v3230_v25 = vld [vmem:[#allocation7 + $0x1a8] sm:$0xff]  }
 0x52e   :  { %2774 = vmatpush3.bf16.msra.mxu1 %v3201_v26  ;;  %v3231_v26 = vld [vmem:[#allocation7 + $0x1b0] sm:$0xff]  }
 0x52f   :  { %2775 = vmatprep.subr.bf16.mxu1 %v3202_v27  ;;  %v3232_v27 = vld [vmem:[#allocation7 + $0x1b8] sm:$0xff]  }
 0x532   :  { %2776 = vmatpush3.bf16.msra.mxu1 %v3203_v28  ;;  %v3233_v28 = vld [vmem:[#allocation7 + $0x1c0] sm:$0xff]  }
 0x533   :  { %2777 = vmatprep.subr.bf16.mxu1 %v3204_v30  ;;  %v3234_v30 = vld [vmem:[#allocation7 + $0x1c8] sm:$0xff]  }
 0x536   :  { %2778 = vmatpush3.bf16.msra.mxu1 %v3205_v31  ;;  %v3235_v31 = vld [vmem:[#allocation7 + $0x1d0] sm:$0xff]  }
 0x537   :  { %2779 = vmatprep.subr.bf16.mxu1 %v3206_v32  ;;  %v3236_v32 = vld [vmem:[#allocation7 + $0x1d8] sm:$0xff]  }
 0x53a   :  { %2780 = vmatpush3.bf16.msra.mxu1 %v3207_v33  ;;  %v3237_v33 = vld [vmem:[#allocation7 + $0x1e0] sm:$0xff]  }
 0x53b   :  { %2781 = vmatprep.subr.bf16.mxu1 %v3208_v34  ;;  %v3238_v34 = vld [vmem:[#allocation7 + $0x1e8] sm:$0xff]  }
 0x53e   :  { %2782 = vmatpush3.bf16.msra.mxu1 %v3209_v35  ;;  %v3239_v35 = vld [vmem:[#allocation7 + $0x1f0] sm:$0xff]  }
 0x53f   :  { %2835 = vmatprep.subr.bf16.mxu1 %v3380_v22 }
 0x5d4   :  { %v1849_v58 = vpop.f32.mrb[24].mxu1 }
 0x5d5   :  { %v1850_v59 = vadd.f32 %v1849_v58, %v1638_v56  ;;  %v1851_v61 = vpop.f32.mrb[25].mxu1 }
 0x5d6   :  { %v1852_v3 = vadd.f32 %v1851_v61, %v1642_v57  ;;  %v1853_v4 = vpop.f32.mrb[26].mxu1  ;;  %v3241_v61 = vld [vmem:[#allocation7 + $0x200] sm:$0xff]  }
 0x5d7   :  { %v1854_v5 = vadd.f32 %v1853_v4, %v1638_v56  ;;  %v1855_v6 = vpop.f32.mrb[27].mxu1  ;;  %v1901_v0 = vmax.f32 %v1850_v59, 0.0  ;;  %v3240_v59 = vld [vmem:[#allocation7 + $0x1f8] sm:$0xff]  }
 0x5d8   :  { %v1856_v63 = vadd.f32 %v1855_v6, %v1642_v57  ;;  %v1902_v1 = vmax.f32 %v1852_v3, 0.0  ;;  %v2270_v3 = vld [vmem:[#allocation9 + $0x7] ss:$0 sm:$0xff] }
 0x5d9   :  { %v1905_v7 = vmax.f32 %v1854_v5, 0.0 }
 0x5da   :  { %v1906_v2 = vmax.f32 %v1856_v63, 0.0 }
 0x5db   :  { %v1974_v41 = vpack.c.bf16 %v1905_v7, %v1901_v0 }
 0x5dc   :  { %v1975_v8 = vpack.c.bf16 %v1906_v2, %v1902_v1 }
 0x5de   :  { %2202 = vmatprep.mubr.bf16.mxu1 %v1975_v8  ;;  %v2379_v8 = vld [vmem:[#allocation9 + $0x20] ss:$0 sm:$0xff] }
 0x5df   :  { %2203 = vmatmul.mubr.bf16.vlgmr.msra.gmra.mrb[32].mxu1 %v1974_v41 }
 0x5e0   :  { %2836 = vmatpush3.bf16.msra.mxu1 %v3226_v60  ;;  %2851 = vmatprep.mubr.msk.bf16.mxu1 %vm3381_vm2, %v3380_v22 }
 0x5e1   :  { %2837 = vmatprep.subr.bf16.mxu1 %v3380_v22 }
 0x5e4   :  { %2838 = vmatpush3.bf16.msra.mxu1 %v3227_v42 }
 0x5e5   :  { %2839 = vmatprep.subr.bf16.mxu1 %v3380_v22 }
 0x5e8   :  { %2840 = vmatpush3.bf16.msra.mxu1 %v3228_v62 }
 0x5e9   :  { %2841 = vmatprep.subr.bf16.mxu1 %v3380_v22 }
 0x5ec   :  { %2842 = vmatpush3.bf16.msra.mxu1 %v3229_v24 }
 0x5ed   :  { %2843 = vmatprep.subr.bf16.mxu1 %v3380_v22 }
 0x5f0   :  { %2844 = vmatpush3.bf16.msra.mxu1 %v3230_v25 }
 0x5f1   :  { %2845 = vmatprep.subr.bf16.mxu1 %v3380_v22 }
 0x5f4   :  { %v1892_v9 = vpop.f32.mrb[28].mxu1  ;;  %2846 = vmatpush3.bf16.msra.mxu1 %v3231_v26 }
 0x5f5   :  { %v1893_v10 = vadd.f32 %v1892_v9, %v1646_v43  ;;  %v1894_v11 = vpop.f32.mrb[29].mxu1  ;;  %2847 = vmatprep.subr.bf16.mxu1 %v3380_v22 }
 0x5f6   :  { %v1895_v12 = vadd.f32 %v1894_v11, %v1650_v45  ;;  %v1896_v13 = vpop.f32.mrb[30].mxu1 }
 0x5f7   :  { %v1897_v14 = vadd.f32 %v1896_v13, %v1646_v43  ;;  %v1898_v15 = vpop.f32.mrb[31].mxu1  ;;  %v1903_v16 = vmax.f32 %v1893_v10, 0.0 }
 0x5f8   :  { %v1899_v23 = vadd.f32 %v1898_v15, %v1650_v45  ;;  %v1904_v18 = vmax.f32 %v1895_v12, 0.0  ;;  %2848 = vmatpush3.bf16.msra.mxu1 %v3232_v27 }
 0x5f9   :  { %v1907_v17 = vmax.f32 %v1897_v14, 0.0  ;;  %2849 = vmatprep.subr.bf16.mxu1 %v3380_v22 }
 0x5fa   :  { %v1908_v19 = vmax.f32 %v1899_v23, 0.0 }
 0x5fb   :  { %v1976_v20 = vpack.c.bf16 %v1907_v17, %v1903_v16 }
 0x5fc   :  { %v1977_v21 = vpack.c.bf16 %v1908_v19, %v1904_v18  ;;  %2850 = vmatpush3.bf16.msra.mxu1 %v3233_v28 }
 0x5fe   :  { %2243 = vmatprep.mubr.bf16.mxu0 %v1977_v21 }
 0x5ff   :  { %2244 = vmatmul.mubr.bf16.vlgmr.msra.gmra.mrb[20].mxu0 %v1976_v20 }
 0x600   :  { %2871 = vmatprep.mubr.msk.bf16.mxu0 %vm3381_vm2, %v3380_v22  ;;  %2856 = vmatpush3.bf16.msra.mxu0 %v3234_v30 }
 0x601   :  { %2857 = vmatprep.subr.bf16.mxu0 %v3380_v22 }
 0x604   :  { %2858 = vmatpush3.bf16.msra.mxu0 %v3235_v31 }
 0x605   :  { %2859 = vmatprep.subr.bf16.mxu0 %v3380_v22 }
 0x608   :  { %2860 = vmatpush3.bf16.msra.mxu0 %v3236_v32 }
 0x609   :  { %2861 = vmatprep.subr.bf16.mxu0 %v3380_v22 }
 0x60c   :  { %2862 = vmatpush3.bf16.msra.mxu0 %v3237_v33 }
 0x60d   :  { %2863 = vmatprep.subr.bf16.mxu0 %v3380_v22 }
 0x610   :  { %2864 = vmatpush3.bf16.msra.mxu0 %v3238_v34 }
 0x611   :  { %2865 = vmatprep.subr.bf16.mxu0 %v3380_v22 }
 0x614   :  { %2866 = vmatpush3.bf16.msra.mxu0 %v3239_v35 }
 0x615   :  { %2867 = vmatprep.subr.bf16.mxu0 %v3380_v22 }
 0x618   :  { %2868 = vmatpush3.bf16.msra.mxu0 %v3240_v59 }
 0x619   :  { %2869 = vmatprep.subr.bf16.mxu0 %v3380_v22 }
 0x61c   :  { %2870 = vmatpush3.bf16.msra.mxu0 %v3241_v61 }
 0x6b2   :  { %v2783_v36 = vpop.f32.mrb[32].mxu1 }
 0x6b3   :  { %v2784_v37 = vpop.f32.mrb[33].mxu1 }
 0x6b4   :  { %v2785_v38 = vadd.f32 %v2784_v37, %v2783_v36  ;;  %v2786_v39 = vpop.f32.mrb[34].mxu1 }
 0x6b5   :  { %v2787_v40 = vpop.f32.mrb[35].mxu1 }
 0x6b6   :  { %v2788_v29 = vadd.f32 %v2787_v40, %v2786_v39  ;;  %v2205_v48 = vadd.f32 %v2785_v38, %v1973_v44 }
 0x6b8   :  { %v2208_v52 = vadd.f32 %v2788_v29, %v1973_v44 }
 0x6d2   :  { %v2805_v46 = vpop.f32.mrb[20].mxu0 }
 0x6d3   :  { %v2806_v47 = vpop.f32.mrb[21].mxu0 }
 0x6d4   :  { %v2807_v49 = vadd.f32 %v2806_v47, %v2805_v46  ;;  %v2808_v50 = vpop.f32.mrb[22].mxu0 }
 0x6d5   :  { %v2809_v51 = vpop.f32.mrb[23].mxu0 }
 0x6d6   :  { %v2246_v53 = vadd.f32 %v2807_v49, %v2205_v48  ;;  %v2810_v54 = vadd.f32 %v2809_v51, %v2808_v50 }
 0x6d8   :  { %v2249_v55 = vadd.f32 %v2810_v54, %v2208_v52  ;;  %v2252_v56 = vmax.f32 %v2246_v53, 0.0 }
 0x6da   :  { %v2253_v57 = vmax.f32 %v2249_v55, 0.0 }
 0x6dc   :  { %v2271_v58 = vpack.c.bf16 %v2253_v57, %v2252_v56 }
 0x6de   :  { %2852 = vmatmul.mubr.bf16.vlgmr.msra.gmra.mrb[36].mxu1 %v2271_v58 }
 0x7b1   :  { %v2354_v4 = vpop.f32.mrb[36].mxu1 }
 0x7b2   :  { %v2355_v5 = vadd.f32 %v2354_v4, %v2270_v3  ;;  %v2853_v6 = vpop.f32.mrb[37].mxu1 }
 0x7b3   :  { %v2357_v63 = vpop.f32.mrb[38].mxu1 }
 0x7b4   :  { %v2358_v0 = vadd.f32 %v2357_v63, %v2270_v3  ;;  %v2854_v7 = vpop.f32.mrb[39].mxu1  ;;  %v2361_v1 = vmax.f32 %v2355_v5, 0.0 }
 0x7b6   :  { %v2362_v2 = vmax.f32 %v2358_v0, 0.0 }
 0x7b8   :  { %v2380_v41 = vpack.c.bf16 %v2362_v2, %v2361_v1 }
 0x7ba   :  { %2872 = vmatmul.mubr.bf16.vlgmr.msra.gmra.mrb[24].mxu0 %v2380_v41 }
 0x88d   :  { %v2463_v43 = vpop.f32.mrb[24].mxu0 }
 0x88e   :  { %v2464_v45 = vadd.f32 %v2463_v43, %v2379_v8  ;;  %v2873_v9 = vpop.f32.mrb[25].mxu0 }
 0x88f   :  { %v2466_v10 = vpop.f32.mrb[26].mxu0 }
 0x890   :  { %v2734_v11 = vmul.f32 -1.442695, %v2464_v45  ;;  %v2467_v12 = vadd.f32 %v2466_v10, %v2379_v8  ;;  %v2874_v13 = vpop.f32.mrb[27].mxu0 }
 0x892   :  { %3242 = vpow2.f32 %v2734_v11  ;;  %v2735_v14 = vmul.f32 -1.442695, %v2467_v12 }
 0x894   :  { %3244 = vpow2.f32 %v2735_v14 }
 0x89c   :  { %v3243_v15 = vpop.eup %3242 }
 0x89d   :  { %v2476_v23 = vadd.f32 1.0, %v3243_v15 }
 0x89e   :  { %v3245_v16 = vpop.eup %3244 }
 0x89f   :  { %3246 = vrcp.f32 %v2476_v23  ;;  %v2477_v17 = vadd.f32 1.0, %v3245_v16 }
 0x8a1   :  { %3248 = vrcp.f32 %v2477_v17 }
 0x8a9   :  { %v3247_v18 = vpop.eup %3246 }
 0x8aa   :  { %2482 = vst [vmem:[%s3564_s7] sm:$0xff] %v3247_v18 }
 0x8ab   :  { %v3249_v19 = vpop.eup %3248 }
 0x8ac   :  { %2483 = vst [vmem:[%s3564_s7 + $0x8] sm:$0xff] %v3249_v19 }
 0x8ad   :  { %2488 = vsyncpa [#allocation3], 1 }
 0x8ae   :  { %2489 = vsyncpa [#allocation5], 1 }
 0x8af   :  { %2490 = vsyncpa [#allocation8], 1 }

</bundles_post_ra>
